<compile_context>
chip_gen: v7x
topology: tpu7x:2x2x1
jax: 0.10.0
libtpu: 0.0.40
codegen_flags: <defaults>
</compile_context>

<pallas_src>
import functools

import jax
import jax.numpy as jnp
from jax.experimental import pallas as pl
from jax.experimental.pallas import tpu as pltpu

BN_EPS = 1e-5
_VMEM = pl.BlockSpec(memory_space=pltpu.MemorySpace.VMEM)


# ----------------------------------------------------------------------------
# Padding helpers (applied ONCE at parameter-packing time / kernel boundary)
# ----------------------------------------------------------------------------
def _pad2(a, rows, cols):
    return jnp.pad(a, ((0, rows - a.shape[0]), (0, cols - a.shape[1])))


def _pad_cols(a, cols):
    return jnp.pad(a, ((0, 0), (0, cols - a.shape[1])))


def _row(a, cols):
    """(d,) vector -> zero-padded (1, cols) row (pre-reshaped once)."""
    return _pad_cols(a.reshape(1, -1), cols)


def _compute_pad(encoder_hidden_dims, decoder_hidden_dims, class_num):
    dims = [encoder_hidden_dims[0] + class_num,
            encoder_hidden_dims[-1] + class_num,
            *encoder_hidden_dims, *decoder_hidden_dims]
    return max(128, -(-max(dims) // 128) * 128)


# ----------------------------------------------------------------------------
# Fused forward kernel (built per model depth / batch size)
# ----------------------------------------------------------------------------
def _make_cvae_kernel(n_enc, n_dec, batch):
    inv_b = 1.0 / float(batch)

    def _relu_bn(pre, g_ref, be_ref):
        h = jnp.maximum(pre, 0.0)
        # One-pass batch statistics: mean and E[h^2].
        mean = jnp.sum(h, axis=0, keepdims=True) * inv_b
        ex2 = jnp.sum(h * h, axis=0, keepdims=True) * inv_b
        var = jnp.maximum(ex2 - mean * mean, 0.0)
        return g_ref[...] * (h - mean) * jax.lax.rsqrt(var + BN_EPS) + be_ref[...]

    def _dot(a, w_ref):
        # NOTE: cast a / w to bf16 here on v6e/v7x for large layer widths.
        return jnp.dot(a, w_ref[...], preferred_element_type=jnp.float32)

    def kernel(*refs):
        x_ref, y_ref, eps_ref = refs[0], refs[1], refs[2]
        xrec_ref, z_ref, ave_ref, logdev_ref = refs[-4:]
        it = iter(refs[3:-4])

        x = x_ref[...]
        y = y_ref[...]
        eps = eps_ref[...]

        # ----- encoder block 0: concat([x, y]) fused via split weight -------
        wx, wy, b, g, be = (next(it) for _ in range(5))
        h = _relu_bn(_dot(x, wx) + _dot(y, wy) + b[...], g, be)

        # ----- remaining encoder blocks --------------------------------------
        for _ in range(n_enc - 1):
            w, b, g, be = (next(it) for _ in range(4))
            h = _relu_bn(_dot(h, w) + b[...], g, be)

        # ----- latent heads + reparameterization -----------------------------
        w_ave, b_ave = next(it), next(it)
        w_dev, b_dev = next(it), next(it)
        ave = _dot(h, w_ave) + b_ave[...]
        log_dev = _dot(h, w_dev) + b_dev[...]
        z = eps * jnp.exp(0.5 * log_dev) + ave

        # ----- decoder block 0: concat([z, y]) fused via split weight --------
        wz, wy2, b, g, be = (next(it) for _ in range(5))
        d = _relu_bn(_dot(z, wz) + _dot(y, wy2) + b[...], g, be)

        # ----- remaining decoder blocks ---------------------------------------
        for _ in range(n_dec - 1):
            w, b, g, be = (next(it) for _ in range(4))
            d = _relu_bn(_dot(d, w) + b[...], g, be)

        # ----- fused sigmoid epilogue (exp + reciprocal land on the EUP) ------
        xrec_ref[...] = 1.0 / (1.0 + jnp.exp(-d))
        z_ref[...] = z
        ave_ref[...] = ave
        logdev_ref[...] = log_dev

    return kernel


# ----------------------------------------------------------------------------
# Parameter construction (mirrors the PyTorch __init__ shapes, logical layout)
# ----------------------------------------------------------------------------
def _init_linear(key, din, dout):
    kw, kb = jax.random.split(key)
    bound = 1.0 / jnp.sqrt(jnp.float32(din))
    w = jax.random.uniform(kw, (dout, din), jnp.float32, -bound, bound)
    b = jax.random.uniform(kb, (dout,), jnp.float32, -bound, bound)
    return w, b


def _init_bn(dout):
    return jnp.ones((dout,), jnp.float32), jnp.zeros((dout,), jnp.float32)


def init_cvae_params(key, encoder_hidden_dims, decoder_hidden_dims, class_num):
    params = {"encoder": [], "decoder": []}
    keys = jax.random.split(key, 32)
    ki = 0

    for i in range(len(encoder_hidden_dims) - 2):
        din = encoder_hidden_dims[i] + (class_num if i == 0 else 0)
        dout = encoder_hidden_dims[i + 1]
        w, b = _init_linear(keys[ki], din, dout); ki += 1
        g, be = _init_bn(dout)
        params["encoder"].append({"w": w, "b": b, "gamma": g, "beta": be})

    w, b = _init_linear(keys[ki], encoder_hidden_dims[-2], encoder_hidden_dims[-1]); ki += 1
    params["lr_dev"] = {"w": w, "b": b}
    w, b = _init_linear(keys[ki], encoder_hidden_dims[-2], encoder_hidden_dims[-1]); ki += 1
    params["lr_ave"] = {"w": w, "b": b}

    for i in range(len(decoder_hidden_dims)):
        din = (encoder_hidden_dims[-1] + class_num) if i == 0 else decoder_hidden_dims[i - 1]
        dout = decoder_hidden_dims[i]
        w, b = _init_linear(keys[ki], din, dout); ki += 1
        g, be = _init_bn(dout)
        params["decoder"].append({"w": w, "b": b, "gamma": g, "beta": be})

    return params


def pack_cvae_params(params, encoder_hidden_dims, decoder_hidden_dims, class_num):
    """One-time repack: transpose, split first-layer weights, pad to (PAD, PAD)."""
    pad = _compute_pad(encoder_hidden_dims, decoder_hidden_dims, class_num)
    din_x = encoder_hidden_dims[0]
    latent = encoder_hidden_dims[-1]
    flat = []

    # encoder block 0: split W along input dim -> (x-part, y-part), transposed
    lyr = params["encoder"][0]
    w = lyr["w"]
    flat += [_pad2(w[:, :din_x].T, pad, pad), _pad2(w[:, din_x:].T, pad, pad),
             _row(lyr["b"], pad), _row(lyr["gamma"], pad), _row(lyr["beta"], pad)]
    for lyr in params["encoder"][1:]:
        flat += [_pad2(lyr["w"].T, pad, pad),
                 _row(lyr["b"], pad), _row(lyr["gamma"], pad), _row(lyr["beta"], pad)]

    for head in ("lr_ave", "lr_dev"):
        flat += [_pad2(params[head]["w"].T, pad, pad), _row(params[head]["b"], pad)]

    # decoder block 0: split W along input dim -> (z-part, y-part), transposed
    lyr = params["decoder"][0]
    w = lyr["w"]
    flat += [_pad2(w[:, :latent].T, pad, pad), _pad2(w[:, latent:].T, pad, pad),
             _row(lyr["b"], pad), _row(lyr["gamma"], pad), _row(lyr["beta"], pad)]
    for lyr in params["decoder"][1:]:
        flat += [_pad2(lyr["w"].T, pad, pad),
                 _row(lyr["b"], pad), _row(lyr["gamma"], pad), _row(lyr["beta"], pad)]

    return tuple(flat)


# ----------------------------------------------------------------------------
# Fused forward (matches CVAE.forward: returns (x_recon, z, ave, log_dev))
# ----------------------------------------------------------------------------
def build_cvae_forward(encoder_hidden_dims, decoder_hidden_dims, class_num):
    n_enc = len(encoder_hidden_dims) - 2
    n_dec = len(decoder_hidden_dims)
    latent = encoder_hidden_dims[-1]
    out_dim = decoder_hidden_dims[-1]
    pad = _compute_pad(encoder_hidden_dims, decoder_hidden_dims, class_num)

    @jax.jit
    def forward(packed_params, x, y, eps):
        B = x.shape[0]
        kernel = _make_cvae_kernel(n_enc, n_dec, B)
        # Pad inputs to lane-dense 128-wide slabs once at the kernel boundary.
        xp = _pad_cols(x, pad)
        yp = _pad_cols(y, pad)
        ep = _pad_cols(eps, pad)
        n_in = 3 + len(packed_params)
        out_shapes = tuple(jax.ShapeDtypeStruct((B, pad), jnp.float32) for _ in range(4))
        xrec_p, z_p, ave_p, logdev_p = pl.pallas_call(
            kernel,
            out_shape=out_shapes,
            in_specs=[_VMEM] * n_in,
            out_specs=(_VMEM,) * 4,
            compiler_params=pltpu.CompilerParams(vmem_limit_bytes=64 * 1024 * 1024),
        )(xp, yp, ep, *packed_params)
        # Unpad once at the exit.
        return (xrec_p[:, :out_dim], z_p[:, :latent],
                ave_p[:, :latent], logdev_p[:, :latent])

    return forward


# ----------------------------------------------------------------------------
# Pure-JAX reference (for correctness check)
# ----------------------------------------------------------------------------
def cvae_reference(params, x, y, eps):
    def block(h, l):
        h = h @ l["w"].T + l["b"]
        h = jnp.maximum(h, 0.0)
        m = h.mean(0, keepdims=True)
        v = h.var(0, keepdims=True)          # biased variance (train-mode BN)
        return l["gamma"] * (h - m) / jnp.sqrt(v + BN_EPS) + l["beta"]

    h = jnp.concatenate([x, y], axis=1)
    for l in params["encoder"]:
        h = block(h, l)
    ave = h @ params["lr_ave"]["w"].T + params["lr_ave"]["b"]
    log_dev = h @ params["lr_dev"]["w"].T + params["lr_dev"]["b"]
    z = eps * jnp.exp(0.5 * log_dev) + ave
    h = jnp.concatenate([z, y], axis=1)
    for l in params["decoder"]:
        h = block(h, l)
    return 1.0 / (1.0 + jnp.exp(-h)), z, ave, log_dev


# ----------------------------------------------------------------------------
if __name__ == "__main__":
    encoder_hidden_dims = [16, 32, 32, 8]   # in_dim, hidden..., latent_dim
    decoder_hidden_dims = [32, 32, 16]      # hidden..., out_dim
    class_num = 4
    batch = 8

    root = jax.random.PRNGKey(0)
    k_param, k_x, k_y, k_eps = jax.random.split(root, 4)

    params = init_cvae_params(k_param, encoder_hidden_dims, decoder_hidden_dims, class_num)
    packed = pack_cvae_params(params, encoder_hidden_dims, decoder_hidden_dims, class_num)
    forward = build_cvae_forward(encoder_hidden_dims, decoder_hidden_dims, class_num)

    x = jax.random.normal(k_x, (batch, encoder_hidden_dims[0]), jnp.float32)
    labels = jax.random.randint(k_y, (batch,), 0, class_num)
    y = jax.nn.one_hot(labels, class_num, dtype=jnp.float32)
    # eps ~ N(0,1) supplied externally (torch RNG stream is not reproducible)
    eps = jax.random.normal(k_eps, (batch, encoder_hidden_dims[-1]), jnp.float32)

    x_recon, z, ave, log_dev = forward(packed, x, y, eps)
    jax.block_until_ready((x_recon, z, ave, log_dev))

    # Shape / sanity checks
    assert x_recon.shape == (batch, decoder_hidden_dims[-1])
    assert z.shape == (batch, encoder_hidden_dims[-1])
    assert ave.shape == (batch, encoder_hidden_dims[-1])
    assert log_dev.shape == (batch, encoder_hidden_dims[-1])
    assert bool(jnp.all(jnp.isfinite(x_recon)))
    assert bool(jnp.all((x_recon >= 0.0) & (x_recon <= 1.0)))

    # Correctness vs. pure-JAX reference
    r_xrec, r_z, r_ave, r_logdev = cvae_reference(params, x, y, eps)
    for got, want in ((x_recon, r_xrec), (z, r_z), (ave, r_ave), (log_dev, r_logdev)):
        assert bool(jnp.allclose(got, want, atol=2e-3, rtol=2e-3)), "mismatch vs reference"

    print("KERNEL_OK")
</pallas_src>

<mosaic_0001>
module attributes {stable_mosaic.version = 11 : i64} {
  func.func @kernel(%arg0: memref<8x128xf32, #tpu.memory_space<vmem>>, %arg1: memref<8x128xf32, #tpu.memory_space<vmem>>, %arg2: memref<8x128xf32, #tpu.memory_space<vmem>>, %arg3: memref<128x128xf32, #tpu.memory_space<vmem>>, %arg4: memref<128x128xf32, #tpu.memory_space<vmem>>, %arg5: memref<1x128xf32, #tpu.memory_space<vmem>>, %arg6: memref<1x128xf32, #tpu.memory_space<vmem>>, %arg7: memref<1x128xf32, #tpu.memory_space<vmem>>, %arg8: memref<128x128xf32, #tpu.memory_space<vmem>>, %arg9: memref<1x128xf32, #tpu.memory_space<vmem>>, %arg10: memref<1x128xf32, #tpu.memory_space<vmem>>, %arg11: memref<1x128xf32, #tpu.memory_space<vmem>>, %arg12: memref<128x128xf32, #tpu.memory_space<vmem>>, %arg13: memref<1x128xf32, #tpu.memory_space<vmem>>, %arg14: memref<128x128xf32, #tpu.memory_space<vmem>>, %arg15: memref<1x128xf32, #tpu.memory_space<vmem>>, %arg16: memref<128x128xf32, #tpu.memory_space<vmem>>, %arg17: memref<128x128xf32, #tpu.memory_space<vmem>>, %arg18: memref<1x128xf32, #tpu.memory_space<vmem>>, %arg19: memref<1x128xf32, #tpu.memory_space<vmem>>, %arg20: memref<1x128xf32, #tpu.memory_space<vmem>>, %arg21: memref<128x128xf32, #tpu.memory_space<vmem>>, %arg22: memref<1x128xf32, #tpu.memory_space<vmem>>, %arg23: memref<1x128xf32, #tpu.memory_space<vmem>>, %arg24: memref<1x128xf32, #tpu.memory_space<vmem>>, %arg25: memref<128x128xf32, #tpu.memory_space<vmem>>, %arg26: memref<1x128xf32, #tpu.memory_space<vmem>>, %arg27: memref<1x128xf32, #tpu.memory_space<vmem>>, %arg28: memref<1x128xf32, #tpu.memory_space<vmem>>, %arg29: memref<8x128xf32, #tpu.memory_space<vmem>>, %arg30: memref<8x128xf32, #tpu.memory_space<vmem>>, %arg31: memref<8x128xf32, #tpu.memory_space<vmem>>, %arg32: memref<8x128xf32, #tpu.memory_space<vmem>>) attributes {dimension_semantics = [], scalar_prefetch = 0 : i64, scratch_operands = 0 : i64, tpu.core_type = #tpu.core_type<tc>} {
    %c0 = arith.constant 0 : index
    %c0_0 = arith.constant 0 : index
    %0 = vector.load %arg0[%c0, %c0_0] : memref<8x128xf32, #tpu.memory_space<vmem>>, vector<8x128xf32>
    %c0_1 = arith.constant 0 : index
    %c0_2 = arith.constant 0 : index
    %1 = vector.load %arg1[%c0_1, %c0_2] : memref<8x128xf32, #tpu.memory_space<vmem>>, vector<8x128xf32>
    %c0_3 = arith.constant 0 : index
    %c0_4 = arith.constant 0 : index
    %2 = vector.load %arg2[%c0_3, %c0_4] : memref<8x128xf32, #tpu.memory_space<vmem>>, vector<8x128xf32>
    %c0_5 = arith.constant 0 : index
    %c0_6 = arith.constant 0 : index
    %3 = vector.load %arg3[%c0_5, %c0_6] : memref<128x128xf32, #tpu.memory_space<vmem>>, vector<128x128xf32>
    %cst = arith.constant dense<0.000000e+00> : vector<8x128xf32>
    %4 = tpu.matmul %0, %3, %cst {dimension_numbers = #tpu.dot_dimension_numbers<[1], [0], [0], [1], [0, 0, 1, 1], [], []>} : vector<8x128xf32>, vector<128x128xf32>, vector<8x128xf32> -> vector<8x128xf32>
    %c0_7 = arith.constant 0 : index
    %c0_8 = arith.constant 0 : index
    %5 = vector.load %arg4[%c0_7, %c0_8] : memref<128x128xf32, #tpu.memory_space<vmem>>, vector<128x128xf32>
    %cst_9 = arith.constant dense<0.000000e+00> : vector<8x128xf32>
    %6 = tpu.matmul %1, %5, %cst_9 {dimension_numbers = #tpu.dot_dimension_numbers<[1], [0], [0], [1], [0, 0, 1, 1], [], []>} : vector<8x128xf32>, vector<128x128xf32>, vector<8x128xf32> -> vector<8x128xf32>
    %7 = arith.addf %4, %6 : vector<8x128xf32>
    %c0_10 = arith.constant 0 : index
    %c0_11 = arith.constant 0 : index
    %8 = vector.load %arg5[%c0_10, %c0_11] : memref<1x128xf32, #tpu.memory_space<vmem>>, vector<1x128xf32>
    %9 = vector.broadcast %8 : vector<1x128xf32> to vector<8x128xf32>
    %10 = arith.addf %7, %9 : vector<8x128xf32>
    %cst_12 = arith.constant 0.000000e+00 : f32
    %11 = vector.broadcast %cst_12 : f32 to vector<8x128xf32>
    %12 = arith.maximumf %10, %11 : vector<8x128xf32>
    %cst_13 = arith.constant dense<0.000000e+00> : vector<128xf32>
    %13 = vector.multi_reduction <add>, %12, %cst_13 [0] : vector<8x128xf32> to vector<128xf32>
    %14 = vector.shape_cast %13 : vector<128xf32> to vector<1x128xf32>
    %cst_14 = arith.constant 1.250000e-01 : f32
    %15 = vector.broadcast %cst_14 : f32 to vector<1x128xf32>
    %16 = arith.mulf %14, %15 : vector<1x128xf32>
    %17 = arith.mulf %12, %12 : vector<8x128xf32>
    %cst_15 = arith.constant dense<0.000000e+00> : vector<128xf32>
    %18 = vector.multi_reduction <add>, %17, %cst_15 [0] : vector<8x128xf32> to vector<128xf32>
    %19 = vector.shape_cast %18 : vector<128xf32> to vector<1x128xf32>
    %cst_16 = arith.constant 1.250000e-01 : f32
    %20 = vector.broadcast %cst_16 : f32 to vector<1x128xf32>
    %21 = arith.mulf %19, %20 : vector<1x128xf32>
    %22 = arith.mulf %16, %16 : vector<1x128xf32>
    %23 = arith.subf %21, %22 : vector<1x128xf32>
    %cst_17 = arith.constant 0.000000e+00 : f32
    %24 = vector.broadcast %cst_17 : f32 to vector<1x128xf32>
    %25 = arith.maximumf %23, %24 : vector<1x128xf32>
    %c0_18 = arith.constant 0 : index
    %c0_19 = arith.constant 0 : index
    %26 = vector.load %arg6[%c0_18, %c0_19] : memref<1x128xf32, #tpu.memory_space<vmem>>, vector<1x128xf32>
    %27 = vector.broadcast %16 : vector<1x128xf32> to vector<8x128xf32>
    %28 = arith.subf %12, %27 : vector<8x128xf32>
    %29 = vector.broadcast %26 : vector<1x128xf32> to vector<8x128xf32>
    %30 = arith.mulf %29, %28 : vector<8x128xf32>
    %cst_20 = arith.constant 9.99999974E-6 : f32
    %31 = vector.broadcast %cst_20 : f32 to vector<1x128xf32>
    %32 = arith.addf %25, %31 : vector<1x128xf32>
    %33 = math.rsqrt %32 : vector<1x128xf32>
    %34 = vector.broadcast %33 : vector<1x128xf32> to vector<8x128xf32>
    %35 = arith.mulf %30, %34 : vector<8x128xf32>
    %c0_21 = arith.constant 0 : index
    %c0_22 = arith.constant 0 : index
    %36 = vector.load %arg7[%c0_21, %c0_22] : memref<1x128xf32, #tpu.memory_space<vmem>>, vector<1x128xf32>
    %37 = vector.broadcast %36 : vector<1x128xf32> to vector<8x128xf32>
    %38 = arith.addf %35, %37 : vector<8x128xf32>
    %c0_23 = arith.constant 0 : index
    %c0_24 = arith.constant 0 : index
    %39 = vector.load %arg8[%c0_23, %c0_24] : memref<128x128xf32, #tpu.memory_space<vmem>>, vector<128x128xf32>
    %cst_25 = arith.constant dense<0.000000e+00> : vector<8x128xf32>
    %40 = tpu.matmul %38, %39, %cst_25 {dimension_numbers = #tpu.dot_dimension_numbers<[1], [0], [0], [1], [0, 0, 1, 1], [], []>} : vector<8x128xf32>, vector<128x128xf32>, vector<8x128xf32> -> vector<8x128xf32>
    %c0_26 = arith.constant 0 : index
    %c0_27 = arith.constant 0 : index
    %41 = vector.load %arg9[%c0_26, %c0_27] : memref<1x128xf32, #tpu.memory_space<vmem>>, vector<1x128xf32>
    %42 = vector.broadcast %41 : vector<1x128xf32> to vector<8x128xf32>
    %43 = arith.addf %40, %42 : vector<8x128xf32>
    %cst_28 = arith.constant 0.000000e+00 : f32
    %44 = vector.broadcast %cst_28 : f32 to vector<8x128xf32>
    %45 = arith.maximumf %43, %44 : vector<8x128xf32>
    %cst_29 = arith.constant dense<0.000000e+00> : vector<128xf32>
    %46 = vector.multi_reduction <add>, %45, %cst_29 [0] : vector<8x128xf32> to vector<128xf32>
    %47 = vector.shape_cast %46 : vector<128xf32> to vector<1x128xf32>
    %cst_30 = arith.constant 1.250000e-01 : f32
    %48 = vector.broadcast %cst_30 : f32 to vector<1x128xf32>
    %49 = arith.mulf %47, %48 : vector<1x128xf32>
    %50 = arith.mulf %45, %45 : vector<8x128xf32>
    %cst_31 = arith.constant dense<0.000000e+00> : vector<128xf32>
    %51 = vector.multi_reduction <add>, %50, %cst_31 [0] : vector<8x128xf32> to vector<128xf32>
    %52 = vector.shape_cast %51 : vector<128xf32> to vector<1x128xf32>
    %cst_32 = arith.constant 1.250000e-01 : f32
    %53 = vector.broadcast %cst_32 : f32 to vector<1x128xf32>
    %54 = arith.mulf %52, %53 : vector<1x128xf32>
    %55 = arith.mulf %49, %49 : vector<1x128xf32>
    %56 = arith.subf %54, %55 : vector<1x128xf32>
    %cst_33 = arith.constant 0.000000e+00 : f32
    %57 = vector.broadcast %cst_33 : f32 to vector<1x128xf32>
    %58 = arith.maximumf %56, %57 : vector<1x128xf32>
    %c0_34 = arith.constant 0 : index
    %c0_35 = arith.constant 0 : index
    %59 = vector.load %arg10[%c0_34, %c0_35] : memref<1x128xf32, #tpu.memory_space<vmem>>, vector<1x128xf32>
    %60 = vector.broadcast %49 : vector<1x128xf32> to vector<8x128xf32>
    %61 = arith.subf %45, %60 : vector<8x128xf32>
    %62 = vector.broadcast %59 : vector<1x128xf32> to vector<8x128xf32>
    %63 = arith.mulf %62, %61 : vector<8x128xf32>
    %cst_36 = arith.constant 9.99999974E-6 : f32
    %64 = vector.broadcast %cst_36 : f32 to vector<1x128xf32>
    %65 = arith.addf %58, %64 : vector<1x128xf32>
    %66 = math.rsqrt %65 : vector<1x128xf32>
    %67 = vector.broadcast %66 : vector<1x128xf32> to vector<8x128xf32>
    %68 = arith.mulf %63, %67 : vector<8x128xf32>
    %c0_37 = arith.constant 0 : index
    %c0_38 = arith.constant 0 : index
    %69 = vector.load %arg11[%c0_37, %c0_38] : memref<1x128xf32, #tpu.memory_space<vmem>>, vector<1x128xf32>
    %70 = vector.broadcast %69 : vector<1x128xf32> to vector<8x128xf32>
    %71 = arith.addf %68, %70 : vector<8x128xf32>
    %c0_39 = arith.constant 0 : index
    %c0_40 = arith.constant 0 : index
    %72 = vector.load %arg12[%c0_39, %c0_40] : memref<128x128xf32, #tpu.memory_space<vmem>>, vector<128x128xf32>
    %cst_41 = arith.constant dense<0.000000e+00> : vector<8x128xf32>
    %73 = tpu.matmul %71, %72, %cst_41 {dimension_numbers = #tpu.dot_dimension_numbers<[1], [0], [0], [1], [0, 0, 1, 1], [], []>} : vector<8x128xf32>, vector<128x128xf32>, vector<8x128xf32> -> vector<8x128xf32>
    %c0_42 = arith.constant 0 : index
    %c0_43 = arith.constant 0 : index
    %74 = vector.load %arg13[%c0_42, %c0_43] : memref<1x128xf32, #tpu.memory_space<vmem>>, vector<1x128xf32>
    %75 = vector.broadcast %74 : vector<1x128xf32> to vector<8x128xf32>
    %76 = arith.addf %73, %75 : vector<8x128xf32>
    %c0_44 = arith.constant 0 : index
    %c0_45 = arith.constant 0 : index
    %77 = vector.load %arg14[%c0_44, %c0_45] : memref<128x128xf32, #tpu.memory_space<vmem>>, vector<128x128xf32>
    %cst_46 = arith.constant dense<0.000000e+00> : vector<8x128xf32>
    %78 = tpu.matmul %71, %77, %cst_46 {dimension_numbers = #tpu.dot_dimension_numbers<[1], [0], [0], [1], [0, 0, 1, 1], [], []>} : vector<8x128xf32>, vector<128x128xf32>, vector<8x128xf32> -> vector<8x128xf32>
    %c0_47 = arith.constant 0 : index
    %c0_48 = arith.constant 0 : index
    %79 = vector.load %arg15[%c0_47, %c0_48] : memref<1x128xf32, #tpu.memory_space<vmem>>, vector<1x128xf32>
    %80 = vector.broadcast %79 : vector<1x128xf32> to vector<8x128xf32>
    %81 = arith.addf %78, %80 : vector<8x128xf32>
    %cst_49 = arith.constant 5.000000e-01 : f32
    %82 = vector.broadcast %cst_49 : f32 to vector<8x128xf32>
    %83 = arith.mulf %82, %81 : vector<8x128xf32>
    %84 = math.exp %83 : vector<8x128xf32>
    %85 = arith.mulf %2, %84 : vector<8x128xf32>
    %86 = arith.addf %85, %76 : vector<8x128xf32>
    %c0_50 = arith.constant 0 : index
    %c0_51 = arith.constant 0 : index
    %87 = vector.load %arg16[%c0_50, %c0_51] : memref<128x128xf32, #tpu.memory_space<vmem>>, vector<128x128xf32>
    %cst_52 = arith.constant dense<0.000000e+00> : vector<8x128xf32>
    %88 = tpu.matmul %86, %87, %cst_52 {dimension_numbers = #tpu.dot_dimension_numbers<[1], [0], [0], [1], [0, 0, 1, 1], [], []>} : vector<8x128xf32>, vector<128x128xf32>, vector<8x128xf32> -> vector<8x128xf32>
    %c0_53 = arith.constant 0 : index
    %c0_54 = arith.constant 0 : index
    %89 = vector.load %arg17[%c0_53, %c0_54] : memref<128x128xf32, #tpu.memory_space<vmem>>, vector<128x128xf32>
    %cst_55 = arith.constant dense<0.000000e+00> : vector<8x128xf32>
    %90 = tpu.matmul %1, %89, %cst_55 {dimension_numbers = #tpu.dot_dimension_numbers<[1], [0], [0], [1], [0, 0, 1, 1], [], []>} : vector<8x128xf32>, vector<128x128xf32>, vector<8x128xf32> -> vector<8x128xf32>
    %91 = arith.addf %88, %90 : vector<8x128xf32>
    %c0_56 = arith.constant 0 : index
    %c0_57 = arith.constant 0 : index
    %92 = vector.load %arg18[%c0_56, %c0_57] : memref<1x128xf32, #tpu.memory_space<vmem>>, vector<1x128xf32>
    %93 = vector.broadcast %92 : vector<1x128xf32> to vector<8x128xf32>
    %94 = arith.addf %91, %93 : vector<8x128xf32>
    %cst_58 = arith.constant 0.000000e+00 : f32
    %95 = vector.broadcast %cst_58 : f32 to vector<8x128xf32>
    %96 = arith.maximumf %94, %95 : vector<8x128xf32>
    %cst_59 = arith.constant dense<0.000000e+00> : vector<128xf32>
    %97 = vector.multi_reduction <add>, %96, %cst_59 [0] : vector<8x128xf32> to vector<128xf32>
    %98 = vector.shape_cast %97 : vector<128xf32> to vector<1x128xf32>
    %cst_60 = arith.constant 1.250000e-01 : f32
    %99 = vector.broadcast %cst_60 : f32 to vector<1x128xf32>
    %100 = arith.mulf %98, %99 : vector<1x128xf32>
    %101 = arith.mulf %96, %96 : vector<8x128xf32>
    %cst_61 = arith.constant dense<0.000000e+00> : vector<128xf32>
    %102 = vector.multi_reduction <add>, %101, %cst_61 [0] : vector<8x128xf32> to vector<128xf32>
    %103 = vector.shape_cast %102 : vector<128xf32> to vector<1x128xf32>
    %cst_62 = arith.constant 1.250000e-01 : f32
    %104 = vector.broadcast %cst_62 : f32 to vector<1x128xf32>
    %105 = arith.mulf %103, %104 : vector<1x128xf32>
    %106 = arith.mulf %100, %100 : vector<1x128xf32>
    %107 = arith.subf %105, %106 : vector<1x128xf32>
    %cst_63 = arith.constant 0.000000e+00 : f32
    %108 = vector.broadcast %cst_63 : f32 to vector<1x128xf32>
    %109 = arith.maximumf %107, %108 : vector<1x128xf32>
    %c0_64 = arith.constant 0 : index
    %c0_65 = arith.constant 0 : index
    %110 = vector.load %arg19[%c0_64, %c0_65] : memref<1x128xf32, #tpu.memory_space<vmem>>, vector<1x128xf32>
    %111 = vector.broadcast %100 : vector<1x128xf32> to vector<8x128xf32>
    %112 = arith.subf %96, %111 : vector<8x128xf32>
    %113 = vector.broadcast %110 : vector<1x128xf32> to vector<8x128xf32>
    %114 = arith.mulf %113, %112 : vector<8x128xf32>
    %cst_66 = arith.constant 9.99999974E-6 : f32
    %115 = vector.broadcast %cst_66 : f32 to vector<1x128xf32>
    %116 = arith.addf %109, %115 : vector<1x128xf32>
    %117 = math.rsqrt %116 : vector<1x128xf32>
    %118 = vector.broadcast %117 : vector<1x128xf32> to vector<8x128xf32>
    %119 = arith.mulf %114, %118 : vector<8x128xf32>
    %c0_67 = arith.constant 0 : index
    %c0_68 = arith.constant 0 : index
    %120 = vector.load %arg20[%c0_67, %c0_68] : memref<1x128xf32, #tpu.memory_space<vmem>>, vector<1x128xf32>
    %121 = vector.broadcast %120 : vector<1x128xf32> to vector<8x128xf32>
    %122 = arith.addf %119, %121 : vector<8x128xf32>
    %c0_69 = arith.constant 0 : index
    %c0_70 = arith.constant 0 : index
    %123 = vector.load %arg21[%c0_69, %c0_70] : memref<128x128xf32, #tpu.memory_space<vmem>>, vector<128x128xf32>
    %cst_71 = arith.constant dense<0.000000e+00> : vector<8x128xf32>
    %124 = tpu.matmul %122, %123, %cst_71 {dimension_numbers = #tpu.dot_dimension_numbers<[1], [0], [0], [1], [0, 0, 1, 1], [], []>} : vector<8x128xf32>, vector<128x128xf32>, vector<8x128xf32> -> vector<8x128xf32>
    %c0_72 = arith.constant 0 : index
    %c0_73 = arith.constant 0 : index
    %125 = vector.load %arg22[%c0_72, %c0_73] : memref<1x128xf32, #tpu.memory_space<vmem>>, vector<1x128xf32>
    %126 = vector.broadcast %125 : vector<1x128xf32> to vector<8x128xf32>
    %127 = arith.addf %124, %126 : vector<8x128xf32>
    %cst_74 = arith.constant 0.000000e+00 : f32
    %128 = vector.broadcast %cst_74 : f32 to vector<8x128xf32>
    %129 = arith.maximumf %127, %128 : vector<8x128xf32>
    %cst_75 = arith.constant dense<0.000000e+00> : vector<128xf32>
    %130 = vector.multi_reduction <add>, %129, %cst_75 [0] : vector<8x128xf32> to vector<128xf32>
    %131 = vector.shape_cast %130 : vector<128xf32> to vector<1x128xf32>
    %cst_76 = arith.constant 1.250000e-01 : f32
    %132 = vector.broadcast %cst_76 : f32 to vector<1x128xf32>
    %133 = arith.mulf %131, %132 : vector<1x128xf32>
    %134 = arith.mulf %129, %129 : vector<8x128xf32>
    %cst_77 = arith.constant dense<0.000000e+00> : vector<128xf32>
    %135 = vector.multi_reduction <add>, %134, %cst_77 [0] : vector<8x128xf32> to vector<128xf32>
    %136 = vector.shape_cast %135 : vector<128xf32> to vector<1x128xf32>
    %cst_78 = arith.constant 1.250000e-01 : f32
    %137 = vector.broadcast %cst_78 : f32 to vector<1x128xf32>
    %138 = arith.mulf %136, %137 : vector<1x128xf32>
    %139 = arith.mulf %133, %133 : vector<1x128xf32>
    %140 = arith.subf %138, %139 : vector<1x128xf32>
    %cst_79 = arith.constant 0.000000e+00 : f32
    %141 = vector.broadcast %cst_79 : f32 to vector<1x128xf32>
    %142 = arith.maximumf %140, %141 : vector<1x128xf32>
    %c0_80 = arith.constant 0 : index
    %c0_81 = arith.constant 0 : index
    %143 = vector.load %arg23[%c0_80, %c0_81] : memref<1x128xf32, #tpu.memory_space<vmem>>, vector<1x128xf32>
    %144 = vector.broadcast %133 : vector<1x128xf32> to vector<8x128xf32>
    %145 = arith.subf %129, %144 : vector<8x128xf32>
    %146 = vector.broadcast %143 : vector<1x128xf32> to vector<8x128xf32>
    %147 = arith.mulf %146, %145 : vector<8x128xf32>
    %cst_82 = arith.constant 9.99999974E-6 : f32
    %148 = vector.broadcast %cst_82 : f32 to vector<1x128xf32>
    %149 = arith.addf %142, %148 : vector<1x128xf32>
    %150 = math.rsqrt %149 : vector<1x128xf32>
    %151 = vector.broadcast %150 : vector<1x128xf32> to vector<8x128xf32>
    %152 = arith.mulf %147, %151 : vector<8x128xf32>
    %c0_83 = arith.constant 0 : index
    %c0_84 = arith.constant 0 : index
    %153 = vector.load %arg24[%c0_83, %c0_84] : memref<1x128xf32, #tpu.memory_space<vmem>>, vector<1x128xf32>
    %154 = vector.broadcast %153 : vector<1x128xf32> to vector<8x128xf32>
    %155 = arith.addf %152, %154 : vector<8x128xf32>
    %c0_85 = arith.constant 0 : index
    %c0_86 = arith.constant 0 : index
    %156 = vector.load %arg25[%c0_85, %c0_86] : memref<128x128xf32, #tpu.memory_space<vmem>>, vector<128x128xf32>
    %cst_87 = arith.constant dense<0.000000e+00> : vector<8x128xf32>
    %157 = tpu.matmul %155, %156, %cst_87 {dimension_numbers = #tpu.dot_dimension_numbers<[1], [0], [0], [1], [0, 0, 1, 1], [], []>} : vector<8x128xf32>, vector<128x128xf32>, vector<8x128xf32> -> vector<8x128xf32>
    %c0_88 = arith.constant 0 : index
    %c0_89 = arith.constant 0 : index
    %158 = vector.load %arg26[%c0_88, %c0_89] : memref<1x128xf32, #tpu.memory_space<vmem>>, vector<1x128xf32>
    %159 = vector.broadcast %158 : vector<1x128xf32> to vector<8x128xf32>
    %160 = arith.addf %157, %159 : vector<8x128xf32>
    %cst_90 = arith.constant 0.000000e+00 : f32
    %161 = vector.broadcast %cst_90 : f32 to vector<8x128xf32>
    %162 = arith.maximumf %160, %161 : vector<8x128xf32>
    %cst_91 = arith.constant dense<0.000000e+00> : vector<128xf32>
    %163 = vector.multi_reduction <add>, %162, %cst_91 [0] : vector<8x128xf32> to vector<128xf32>
    %164 = vector.shape_cast %163 : vector<128xf32> to vector<1x128xf32>
    %cst_92 = arith.constant 1.250000e-01 : f32
    %165 = vector.broadcast %cst_92 : f32 to vector<1x128xf32>
    %166 = arith.mulf %164, %165 : vector<1x128xf32>
    %167 = arith.mulf %162, %162 : vector<8x128xf32>
    %cst_93 = arith.constant dense<0.000000e+00> : vector<128xf32>
    %168 = vector.multi_reduction <add>, %167, %cst_93 [0] : vector<8x128xf32> to vector<128xf32>
    %169 = vector.shape_cast %168 : vector<128xf32> to vector<1x128xf32>
    %cst_94 = arith.constant 1.250000e-01 : f32
    %170 = vector.broadcast %cst_94 : f32 to vector<1x128xf32>
    %171 = arith.mulf %169, %170 : vector<1x128xf32>
    %172 = arith.mulf %166, %166 : vector<1x128xf32>
    %173 = arith.subf %171, %172 : vector<1x128xf32>
    %cst_95 = arith.constant 0.000000e+00 : f32
    %174 = vector.broadcast %cst_95 : f32 to vector<1x128xf32>
    %175 = arith.maximumf %173, %174 : vector<1x128xf32>
    %c0_96 = arith.constant 0 : index
    %c0_97 = arith.constant 0 : index
    %176 = vector.load %arg27[%c0_96, %c0_97] : memref<1x128xf32, #tpu.memory_space<vmem>>, vector<1x128xf32>
    %177 = vector.broadcast %166 : vector<1x128xf32> to vector<8x128xf32>
    %178 = arith.subf %162, %177 : vector<8x128xf32>
    %179 = vector.broadcast %176 : vector<1x128xf32> to vector<8x128xf32>
    %180 = arith.mulf %179, %178 : vector<8x128xf32>
    %cst_98 = arith.constant 9.99999974E-6 : f32
    %181 = vector.broadcast %cst_98 : f32 to vector<1x128xf32>
    %182 = arith.addf %175, %181 : vector<1x128xf32>
    %183 = math.rsqrt %182 : vector<1x128xf32>
    %184 = vector.broadcast %183 : vector<1x128xf32> to vector<8x128xf32>
    %185 = arith.mulf %180, %184 : vector<8x128xf32>
    %c0_99 = arith.constant 0 : index
    %c0_100 = arith.constant 0 : index
    %186 = vector.load %arg28[%c0_99, %c0_100] : memref<1x128xf32, #tpu.memory_space<vmem>>, vector<1x128xf32>
    %187 = vector.broadcast %186 : vector<1x128xf32> to vector<8x128xf32>
    %188 = arith.addf %185, %187 : vector<8x128xf32>
    %cst_101 = arith.constant 0.000000e+00 : f32
    %189 = vector.broadcast %cst_101 : f32 to vector<8x128xf32>
    %190 = arith.subf %189, %188 : vector<8x128xf32>
    %191 = math.exp %190 : vector<8x128xf32>
    %cst_102 = arith.constant 1.000000e+00 : f32
    %192 = vector.broadcast %cst_102 : f32 to vector<8x128xf32>
    %193 = arith.addf %192, %191 : vector<8x128xf32>
    %cst_103 = arith.constant 1.000000e+00 : f32
    %194 = vector.broadcast %cst_103 : f32 to vector<8x128xf32>
    %195 = arith.divf %194, %193 : vector<8x128xf32>
    %c0_104 = arith.constant 0 : index
    %c0_105 = arith.constant 0 : index
    %196 = vector.load %arg29[%c0_104, %c0_105] : memref<8x128xf32, #tpu.memory_space<vmem>>, vector<8x128xf32>
    tpu.vector_store %arg29[%c0_104, %c0_105], %195 {strides = array<i32>} : memref<8x128xf32, #tpu.memory_space<vmem>>, vector<8x128xf32>,
    %c0_106 = arith.constant 0 : index
    %c0_107 = arith.constant 0 : index
    %197 = vector.load %arg30[%c0_106, %c0_107] : memref<8x128xf32, #tpu.memory_space<vmem>>, vector<8x128xf32>
    tpu.vector_store %arg30[%c0_106, %c0_107], %86 {strides = array<i32>} : memref<8x128xf32, #tpu.memory_space<vmem>>, vector<8x128xf32>,
    %c0_108 = arith.constant 0 : index
    %c0_109 = arith.constant 0 : index
    %198 = vector.load %arg31[%c0_108, %c0_109] : memref<8x128xf32, #tpu.memory_space<vmem>>, vector<8x128xf32>
    tpu.vector_store %arg31[%c0_108, %c0_109], %76 {strides = array<i32>} : memref<8x128xf32, #tpu.memory_space<vmem>>, vector<8x128xf32>,
    %c0_110 = arith.constant 0 : index
    %c0_111 = arith.constant 0 : index
    %199 = vector.load %arg32[%c0_110, %c0_111] : memref<8x128xf32, #tpu.memory_space<vmem>>, vector<8x128xf32>
    tpu.vector_store %arg32[%c0_110, %c0_111], %81 {strides = array<i32>} : memref<8x128xf32, #tpu.memory_space<vmem>>, vector<8x128xf32>,
    return
  }
}

</mosaic_0001>

<bundles_post_ra>
// kernel: forward.1
= control target key start
LH: loop header
LB: loop body
LE: loop exit
PB: predicated region body
PF: predicated region fallthrough
CT: control target
= control target key end

     0   :  { %s3173_s6 = smov 1   ;;  %s3174_s10 = smov 2   ;;  %s3680_s0 = inlined_call_operand.smem [shape: u32[33], index: -1, kind: input, shape index: {}] }
   0x1   :  { %s3251_s5 = sld [smem:[%s3680_s0]]   ;;  %s3175_s14 = smov 3  }
   0x2   :  { %s3256_s9 = sld [smem:[%s3680_s0 + %s3173_s6]]   ;;  %s3176_s18 = smov 4  }
   0x3   :  { %s3261_s13 = sld [smem:[%s3680_s0 + %s3174_s10]]   ;;  %s3177_s22 = smov 5  }
   0x4   :  { %s3266_s17 = sld [smem:[%s3680_s0 + %s3175_s14]]   ;;  %s3178_s26 = smov 6  }
   0x5   :  { %s3271_s21 = sld [smem:[%s3680_s0 + %s3176_s18]]   ;;  %s3179_s30 = smov 7  }
   0x6   :  { %s3276_s25 = sld [smem:[%s3680_s0 + %s3177_s22]]   ;;  %s3180_s4 = smov 8  }
   0x7   :  { %3696 = sst [smem:[#allocation71_spill]] %s3251_s5  ;;  %s3181_s10 = smov 9  }
   0x8   :  { %s3281_s29 = sld [smem:[%s3680_s0 + %s3178_s26]]   ;;  %s3182_s15 = smov 10  }
   0x9   :  { %3697 = sst [smem:[#allocation72_spill]] %s3261_s13  ;;  %s3183_s20 = smov 11  }
   0xa   :  { %s3286_s3 = sld [smem:[%s3680_s0 + %s3179_s30]]   ;;  %s3184_s26 = smov 12  }
   0xb   :  { %3698 = sst [smem:[#allocation73_spill]] %s3271_s21  ;;  %s3185_s1 = smov 13  }
   0xc   :  { %s3291_s8 = sld [smem:[%s3680_s0 + %s3180_s4]]   ;;  %s3186_s7 = smov 14  }
   0xd   :  { %s3296_s14 = sld [smem:[%s3680_s0 + %s3181_s10]]   ;;  %s3188_s22 = smov 16  }
   0xe   :  { %3699 = sst [smem:[#allocation74_spill]] %s3281_s29  ;;  %s3189_s28 = smov 17  }
   0xf   :  { %s3301_s19 = sld [smem:[%s3680_s0 + %s3182_s15]]   ;;  %s3187_s15 = smov 15  }
  0x10   :  { %s3306_s24 = sld [smem:[%s3680_s0 + %s3183_s20]]  }
  0x11   :  { %s3311_s30 = sld [smem:[%s3680_s0 + %s3184_s26]]  }
  0x12   :  { %3700 = sst [smem:[#allocation75_spill]] %s3291_s8 }
  0x13   :  { %s3316_s6 = sld [smem:[%s3680_s0 + %s3185_s1]]  }
  0x14   :  { %s3321_s12 = sld [smem:[%s3680_s0 + %s3186_s7]]   ;;  %s3190_s7 = smov 18  }
  0x15   :  { %3701 = sst [smem:[#allocation76_spill]] %s3301_s19 }
  0x16   :  { %s3326_s20 = sld [smem:[%s3680_s0 + %s3187_s15]]   ;;  %s3191_s15 = smov 19  }
  0x17   :  { %3702 = sst [smem:[#allocation77_spill]] %s3311_s30 }
  0x18   :  { %s3331_s27 = sld [smem:[%s3680_s0 + %s3188_s22]]   ;;  %s3192_s22 = smov 20  }
  0x19   :  { %s3336_s4 = sld [smem:[%s3680_s0 + %s3189_s28]]   ;;  %s3193_s28 = smov 21  }
  0x1a   :  { %3703 = sst [smem:[#allocation78_spill]] %s3321_s12 }
  0x1b   :  { %s3341_s12 = sld [smem:[%s3680_s0 + %s3190_s7]]   ;;  %s3194_s7 = smov 22  }
  0x1c   :  { %s3346_s30 = sld [smem:[%s3680_s0 + %s3191_s15]]   ;;  %s3195_s15 = smov 23  }
  0x1d   :  { %s3356_s19 = sld [smem:[%s3680_s0 + %s3193_s28]]   ;;  %s3197_s28 = smov 25  }
  0x1e   :  { %3704 = sst [smem:[#allocation79_spill]] %s3331_s27 }
  0x1f   :  { %s3351_s27 = sld [smem:[%s3680_s0 + %s3192_s22]]   ;;  %s3196_s22 = smov 24  }
  0x20   :  { %s3366_s8 = sld [smem:[%s3680_s0 + %s3195_s15]]   ;;  %s3199_s15 = smov 27  }
  0x21   :  { %3705 = sst [smem:[#allocation80_spill]] %s3341_s12 }
  0x22   :  { %s3361_s12 = sld [smem:[%s3680_s0 + %s3194_s7]]   ;;  %s3198_s7 = smov 26  }
  0x23   :  { %s3376_s29 = sld [smem:[%s3680_s0 + %s3197_s28]]   ;;  %s3201_s28 = smov 29  }
  0x24   :  { %s3386_s21 = sld [smem:[%s3680_s0 + %s3199_s15]]   ;;  %s3203_s15 = smov 31  }
  0x25   :  { %3706 = sst [smem:[#allocation81_spill]] %s3351_s27 }
  0x26   :  { %s3371_s27 = sld [smem:[%s3680_s0 + %s3196_s22]]   ;;  %s3200_s22 = smov 28  }
  0x27   :  { %s3396_s13 = sld [smem:[%s3680_s0 + %s3201_s28]]  }
  0x28   :  { %3707 = sst [smem:[#allocation82_spill]] %s3361_s12 }
  0x29   :  { %s3381_s12 = sld [smem:[%s3680_s0 + %s3198_s7]]   ;;  %s3202_s7 = smov 30  }
  0x2a   :  { %s3406_s5 = sld [smem:[%s3680_s0 + %s3203_s15]]  }
  0x2c   :  { %3708 = sst [smem:[#allocation83_spill]] %s3371_s27 }
  0x2d   :  { %s3391_s27 = sld [smem:[%s3680_s0 + %s3200_s22]]   ;;  %s3204_s22 = smov 32  }
  0x2f   :  { %3709 = sst [smem:[#allocation84_spill]] %s3381_s12 }
  0x30   :  { %s3401_s12 = sld [smem:[%s3680_s0 + %s3202_s7]]  }
  0x33   :  { %3710 = sst [smem:[#allocation85_spill]] %s3391_s27 }
  0x34   :  { %s3411_s27 = sld [smem:[%s3680_s0 + %s3204_s22]]  }
  0x35   :  { %71 = vsyncpa [#allocation3], 0 }
  0x36   :  { %72 = vsyncpa [#allocation6], 0 }
  0x37   :  { %73 = vsyncpa [#allocation9], 0 }
  0x38   :  { %74 = vsyncpa [#allocation12], 0 }
  0x39   :  { %75 = vsyncpa [#allocation15], 0 }
  0x3a   :  { %76 = vsyncpa [#allocation18], 0 }
  0x3b   :  { %77 = vsyncpa [#allocation21], 0 }
  0x3c   :  { %78 = vsyncpa [#allocation24], 0 }
  0x3d   :  { %79 = vsyncpa [#allocation27], 0 }
  0x3e   :  { %80 = vsyncpa [#allocation30], 0 }
  0x3f   :  { %81 = vsyncpa [#allocation33], 0 }
  0x40   :  { %82 = vsyncpa [#allocation36], 0 }
  0x41   :  { %83 = vsyncpa [#allocation39], 0 }
  0x42   :  { %84 = vsyncpa [#allocation42], 0 }
  0x43   :  { %85 = vsyncpa [#allocation45], 0 }
  0x44   :  { %86 = vsyncpa [#allocation4], 0 }
  0x45   :  { %87 = vsyncpa [#allocation49], 0 }
  0x46   :  { %88 = vsyncpa [#allocation52], 0  ;;  %s3205_s0 = smov [#allocation5]   ;;  %s3206_s1 = smov [#allocation8]  }
  0x47   :  { %s105_s28 = sshll.u32 %s3205_s0, 4  ;;  %s124_s2 = sshll.u32 %s3206_s1, 4  ;;  %s106_s28 = int_to_ptr.vmem [resolvable:$true] %s105_s28  ;;  %s3413_s2 = int_to_ptr.vmem [resolvable:$true] %s124_s2 }
  0x48   :  { %s2411_s7 = scalar_lea.hbm %s3256_s9, 128 }
  0x49   :  { %p2412_p0 = scmp.ne.s32.totalorder %s3256_s9, %s2411_s7  ;;  %p2415_p1 = scmp.lt.u32.totalorder %s2411_s7, %s3256_s9 }
  0x4b   :  { %p2417_p2 = pnand %p2415_p1, %p2412_p0 }
  0x4d   :  { %2420 = shalt.err (!%p2417_p2)
}
  0x4e   :  { %s2421_s10 = scalar_lea.vmem %s106_s28, 128  ;;  %p2426_p4 = scmp.lt.s32.totalorder %s106_s28, %s106_s28 }
  0x4f   :  { %p2422_p3 = scmp.ne.s32.totalorder %s106_s28, %s2421_s10  ;;  %p2427_p5 = scmp.lt.s32.totalorder %s2421_s10, %s2421_s10 }
  0x51   :  { %p2428_p6 = por %p2427_p5, %p2426_p4 }
  0x53   :  { %p2429_p7 = pnand %p2428_p6, %p2422_p3 }
  0x55   :  { %2432 = shalt.err (!%p2429_p7)
}
  0x56   :  { %108 = dma.hbm_to_vmem [thread:$0]  %s3256_s9, 128, %s106_s28, [#allocation6]  }
  0x57   :  { %s2433_s11 = scalar_lea.hbm %s3266_s17, 2048 }
  0x58   :  { %p2434_p8 = scmp.ne.s32.totalorder %s3266_s17, %s2433_s11  ;;  %p2437_p9 = scmp.lt.u32.totalorder %s2433_s11, %s3266_s17 }
  0x5a   :  { %p2439_p10 = pnand %p2437_p9, %p2434_p8 }
  0x5c   :  { %2442 = shalt.err (!%p2439_p10)
}
  0x5d   :  { %s2443_s15 = scalar_lea.vmem %s3413_s2, 2048  ;;  %p2448_p12 = scmp.lt.s32.totalorder %s3413_s2, %s3413_s2 }
  0x5e   :  { %p2444_p11 = scmp.ne.s32.totalorder %s3413_s2, %s2443_s15  ;;  %p2449_p13 = scmp.lt.s32.totalorder %s2443_s15, %s2443_s15 }
  0x60   :  { %p2450_p0 = por %p2449_p13, %p2448_p12 }
  0x62   :  { %p2451_p1 = pnand %p2450_p0, %p2444_p11 }
  0x64   :  { %2454 = shalt.err (!%p2451_p1)
}
  0x65   :  { %s3207_s16 = smov 128   ;;  %s3208_s9 = smov 8  }
  0x66   :  { %130 = dma.hbm_to_vmem [thread:$0]  %s3266_s17, 2048, %s3413_s2, [#allocation9], %s3207_s16, %s3207_s16, %s3208_s9  }
  0x67   :  { %s3209_s18 = smov [#allocation11]   ;;  %s3210_s23 = smov [#allocation14]  }
  0x68   :  { %s149_s22 = sshll.u32 %s3209_s18, 4  ;;  %s169_s26 = sshll.u32 %s3210_s23, 4  ;;  %s150_s22 = int_to_ptr.vmem [resolvable:$true] %s149_s22  ;;  %s170_s26 = int_to_ptr.vmem [resolvable:$true] %s169_s26 }
  0x69   :  { %s2455_s0 = scalar_lea.hbm %s3276_s25, 16 }
  0x6a   :  { %p2456_p2 = scmp.ne.s32.totalorder %s3276_s25, %s2455_s0  ;;  %p2459_p3 = scmp.lt.u32.totalorder %s2455_s0, %s3276_s25 }
  0x6c   :  { %p2461_p4 = pnand %p2459_p3, %p2456_p2 }
  0x6e   :  { %2464 = shalt.err (!%p2461_p4)
}
  0x6f   :  { %s2465_s28 = scalar_lea.vmem %s150_s22, 16  ;;  %s2469_s1 = scalar_lea.vmem %s150_s22, 32 }
  0x70   :  { %p2466_p5 = scmp.ne.s32.totalorder %s150_s22, %s2465_s28  ;;  %p2470_p6 = scmp.lt.s32.totalorder %s150_s22, %s150_s22 }
  0x71   :  { %p2471_p7 = scmp.lt.s32.totalorder %s2469_s1, %s2465_s28 }
  0x73   :  { %p2472_p8 = por %p2471_p7, %p2470_p6 }
  0x75   :  { %p2473_p9 = pnand %p2472_p8, %p2466_p5 }
  0x77   :  { %2476 = shalt.err (!%p2473_p9)
}
  0x78   :  { %152 = dma.hbm_to_vmem [thread:$0]  %s3276_s25, 16, %s150_s22, [#allocation12]  }
  0x79   :  { %s2477_s17 = scalar_lea.hbm %s3286_s3, 16 }
  0x7a   :  { %p2478_p10 = scmp.ne.s32.totalorder %s3286_s3, %s2477_s17  ;;  %p2481_p11 = scmp.lt.u32.totalorder %s2477_s17, %s3286_s3 }
  0x7c   :  { %p2483_p12 = pnand %p2481_p11, %p2478_p10 }
  0x7e   :  { %2486 = shalt.err (!%p2483_p12)
}
  0x7f   :  { %s2487_s2 = scalar_lea.vmem %s170_s26, 16  ;;  %s2491_s7 = scalar_lea.vmem %s170_s26, 32 }
  0x80   :  { %p2488_p13 = scmp.ne.s32.totalorder %s170_s26, %s2487_s2  ;;  %p2492_p0 = scmp.lt.s32.totalorder %s170_s26, %s170_s26 }
  0x81   :  { %p2493_p1 = scmp.lt.s32.totalorder %s2491_s7, %s2487_s2 }
  0x83   :  { %p2494_p2 = por %p2493_p1, %p2492_p0 }
  0x85   :  { %p2495_p3 = pnand %p2494_p2, %p2488_p13 }
  0x87   :  { %2498 = shalt.err (!%p2495_p3)
}
  0x88   :  { %172 = dma.hbm_to_vmem [thread:$0]  %s3286_s3, 16, %s170_s26, [#allocation15]  }
  0x89   :  { %s3211_s10 = smov [#allocation17]   ;;  %s3212_s11 = smov [#allocation20]  }
  0x8a   :  { %s191_s25 = sshll.u32 %s3211_s10, 4  ;;  %s211_s15 = sshll.u32 %s3212_s11, 4  ;;  %s192_s25 = int_to_ptr.vmem [resolvable:$true] %s191_s25  ;;  %s212_s15 = int_to_ptr.vmem [resolvable:$true] %s211_s15 }
  0x8b   :  { %s2499_s18 = scalar_lea.hbm %s3296_s14, 16 }
  0x8c   :  { %p2500_p4 = scmp.ne.s32.totalorder %s3296_s14, %s2499_s18  ;;  %p2503_p5 = scmp.lt.u32.totalorder %s2499_s18, %s3296_s14 }
  0x8e   :  { %p2505_p6 = pnand %p2503_p5, %p2500_p4 }
  0x90   :  { %2508 = shalt.err (!%p2505_p6)
}
  0x91   :  { %s2509_s22 = scalar_lea.vmem %s192_s25, 16  ;;  %s2513_s23 = scalar_lea.vmem %s192_s25, 32 }
  0x92   :  { %p2510_p7 = scmp.ne.s32.totalorder %s192_s25, %s2509_s22  ;;  %p2514_p8 = scmp.lt.s32.totalorder %s192_s25, %s192_s25 }
  0x93   :  { %p2515_p9 = scmp.lt.s32.totalorder %s2513_s23, %s2509_s22 }
  0x95   :  { %p2516_p10 = por %p2515_p9, %p2514_p8 }
  0x97   :  { %p2517_p11 = pnand %p2516_p10, %p2510_p7 }
  0x99   :  { %2520 = shalt.err (!%p2517_p11)
}
  0x9a   :  { %194 = dma.hbm_to_vmem [thread:$0]  %s3296_s14, 16, %s192_s25, [#allocation18]  }
  0x9b   :  { %s2521_s3 = scalar_lea.hbm %s3306_s24, 16 }
  0x9c   :  { %p2522_p12 = scmp.ne.s32.totalorder %s3306_s24, %s2521_s3  ;;  %p2525_p13 = scmp.lt.u32.totalorder %s2521_s3, %s3306_s24 }
  0x9e   :  { %p2527_p0 = pnand %p2525_p13, %p2522_p12 }
  0xa0   :  { %2530 = shalt.err (!%p2527_p0)
}
  0xa1   :  { %s2531_s26 = scalar_lea.vmem %s212_s15, 16  ;;  %s2535_s0 = scalar_lea.vmem %s212_s15, 32 }
  0xa2   :  { %p2532_p1 = scmp.ne.s32.totalorder %s212_s15, %s2531_s26  ;;  %p2536_p2 = scmp.lt.s32.totalorder %s212_s15, %s212_s15 }
  0xa3   :  { %p2537_p3 = scmp.lt.s32.totalorder %s2535_s0, %s2531_s26 }
  0xa5   :  { %p2538_p4 = por %p2537_p3, %p2536_p2 }
  0xa7   :  { %p2539_p5 = pnand %p2538_p4, %p2532_p1 }
  0xa9   :  { %2542 = shalt.err (!%p2539_p5)
}
  0xaa   :  { %214 = dma.hbm_to_vmem [thread:$0]  %s3306_s24, 16, %s212_s15, [#allocation21]  }
  0xab   :  { %s3213_s28 = smov [#allocation23]   ;;  %s3214_s1 = smov [#allocation26]  }
  0xac   :  { %s233_s14 = sshll.u32 %s3213_s28, 4  ;;  %s255_s17 = sshll.u32 %s3214_s1, 4  ;;  %s234_s14 = int_to_ptr.vmem [resolvable:$true] %s233_s14  ;;  %s256_s17 = int_to_ptr.vmem [resolvable:$true] %s255_s17 }
  0xad   :  { %s2543_s2 = scalar_lea.hbm %s3316_s6, 16 }
  0xae   :  { %p2544_p6 = scmp.ne.s32.totalorder %s3316_s6, %s2543_s2  ;;  %p2547_p7 = scmp.lt.u32.totalorder %s2543_s2, %s3316_s6 }
  0xb0   :  { %p2549_p8 = pnand %p2547_p7, %p2544_p6 }
  0xb2   :  { %2552 = shalt.err (!%p2549_p8)
}
  0xb3   :  { %s2553_s7 = scalar_lea.vmem %s234_s14, 16  ;;  %s2557_s10 = scalar_lea.vmem %s234_s14, 32 }
  0xb4   :  { %p2554_p9 = scmp.ne.s32.totalorder %s234_s14, %s2553_s7  ;;  %p2558_p10 = scmp.lt.s32.totalorder %s234_s14, %s234_s14 }
  0xb5   :  { %p2559_p11 = scmp.lt.s32.totalorder %s2557_s10, %s2553_s7 }
  0xb7   :  { %p2560_p12 = por %p2559_p11, %p2558_p10 }
  0xb9   :  { %p2561_p13 = pnand %p2560_p12, %p2554_p9 }
  0xbb   :  { %2564 = shalt.err (!%p2561_p13)
}
  0xbc   :  { %236 = dma.hbm_to_vmem [thread:$0]  %s3316_s6, 16, %s234_s14, [#allocation24]  }
  0xbd   :  { %s2565_s24 = scalar_lea.hbm %s3326_s20, 16 }
  0xbe   :  { %p2566_p0 = scmp.ne.s32.totalorder %s3326_s20, %s2565_s24  ;;  %p2569_p1 = scmp.lt.u32.totalorder %s2565_s24, %s3326_s20 }
  0xc0   :  { %p2571_p2 = pnand %p2569_p1, %p2566_p0 }
  0xc2   :  { %2574 = shalt.err (!%p2571_p2)
}
  0xc3   :  { %s2575_s25 = scalar_lea.vmem %s256_s17, 16  ;;  %s2579_s11 = scalar_lea.vmem %s256_s17, 32 }
  0xc4   :  { %p2576_p3 = scmp.ne.s32.totalorder %s256_s17, %s2575_s25  ;;  %p2580_p4 = scmp.lt.s32.totalorder %s256_s17, %s256_s17 }
  0xc5   :  { %p2581_p5 = scmp.lt.s32.totalorder %s2579_s11, %s2575_s25 }
  0xc7   :  { %p2582_p6 = por %p2581_p5, %p2580_p4 }
  0xc9   :  { %p2583_p7 = pnand %p2582_p6, %p2576_p3 }
  0xcb   :  { %2586 = shalt.err (!%p2583_p7)
}
  0xcc   :  { %258 = dma.hbm_to_vmem [thread:$0]  %s3326_s20, 16, %s256_s17, [#allocation27]  }
  0xcd   :  { %s3215_s15 = smov [#allocation29]   ;;  %s3216_s18 = smov [#allocation32]  }
  0xce   :  { %s276_s6 = sshll.u32 %s3215_s15, 4  ;;  %s299_s22 = sshll.u32 %s3216_s18, 4  ;;  %s277_s6 = int_to_ptr.vmem [resolvable:$true] %s276_s6  ;;  %s300_s22 = int_to_ptr.vmem [resolvable:$true] %s299_s22 }
  0xcf   :  { %s2587_s23 = scalar_lea.hbm %s3336_s4, 2048 }
  0xd0   :  { %p2588_p8 = scmp.ne.s32.totalorder %s3336_s4, %s2587_s23  ;;  %p2591_p9 = scmp.lt.u32.totalorder %s2587_s23, %s3336_s4 }
  0xd2   :  { %p2593_p10 = pnand %p2591_p9, %p2588_p8 }
  0xd4   :  { %2596 = shalt.err (!%p2593_p10)
}
  0xd5   :  { %s2597_s3 = scalar_lea.vmem %s277_s6, 2048  ;;  %p2602_p12 = scmp.lt.s32.totalorder %s277_s6, %s277_s6 }
  0xd6   :  { %p2598_p11 = scmp.ne.s32.totalorder %s277_s6, %s2597_s3  ;;  %p2603_p13 = scmp.lt.s32.totalorder %s2597_s3, %s2597_s3 }
  0xd8   :  { %p2604_p0 = por %p2603_p13, %p2602_p12 }
  0xda   :  { %p2605_p1 = pnand %p2604_p0, %p2598_p11 }
  0xdc   :  { %2608 = shalt.err (!%p2605_p1)
}
  0xdd   :  { %282 = dma.hbm_to_vmem [thread:$0]  %s3336_s4, 2048, %s277_s6, [#allocation30], %s3207_s16, %s3207_s16, %s3208_s9  }
  0xde   :  { %s2609_s20 = scalar_lea.hbm %s3346_s30, 16 }
  0xdf   :  { %p2610_p2 = scmp.ne.s32.totalorder %s3346_s30, %s2609_s20  ;;  %p2613_p3 = scmp.lt.u32.totalorder %s2609_s20, %s3346_s30 }
  0xe1   :  { %p2615_p4 = pnand %p2613_p3, %p2610_p2 }
  0xe3   :  { %2618 = shalt.err (!%p2615_p4)
}
  0xe4   :  { %s2619_s26 = scalar_lea.vmem %s300_s22, 16  ;;  %s2623_s0 = scalar_lea.vmem %s300_s22, 32 }
  0xe5   :  { %p2620_p5 = scmp.ne.s32.totalorder %s300_s22, %s2619_s26  ;;  %p2624_p6 = scmp.lt.s32.totalorder %s300_s22, %s300_s22 }
  0xe6   :  { %p2625_p7 = scmp.lt.s32.totalorder %s2623_s0, %s2619_s26 }
  0xe8   :  { %p2626_p8 = por %p2625_p7, %p2624_p6 }
  0xea   :  { %p2627_p9 = pnand %p2626_p8, %p2620_p5 }
  0xec   :  { %2630 = shalt.err (!%p2627_p9)
}
  0xed   :  { %302 = dma.hbm_to_vmem [thread:$0]  %s3346_s30, 16, %s300_s22, [#allocation33]  }
  0xee   :  { %s3217_s28 = smov [#allocation35]   ;;  %s3218_s14 = smov [#allocation38]  }
  0xef   :  { %s318_s4 = sshll.u32 %s3217_s28, 4  ;;  %s341_s1 = sshll.u32 %s3218_s14, 4  ;;  %s319_s4 = int_to_ptr.vmem [resolvable:$true] %s318_s4  ;;  %s342_s1 = int_to_ptr.vmem [resolvable:$true] %s341_s1 }
  0xf0   :  { %s2631_s17 = scalar_lea.hbm %s3356_s19, 2048 }
  0xf1   :  { %p2632_p10 = scmp.ne.s32.totalorder %s3356_s19, %s2631_s17  ;;  %p2635_p11 = scmp.lt.u32.totalorder %s2631_s17, %s3356_s19 }
  0xf3   :  { %p2637_p12 = pnand %p2635_p11, %p2632_p10 }
  0xf5   :  { %2640 = shalt.err (!%p2637_p12)
}
  0xf6   :  { %s2641_s2 = scalar_lea.vmem %s319_s4, 2048  ;;  %p2646_p0 = scmp.lt.s32.totalorder %s319_s4, %s319_s4 }
  0xf7   :  { %p2642_p13 = scmp.ne.s32.totalorder %s319_s4, %s2641_s2  ;;  %p2647_p1 = scmp.lt.s32.totalorder %s2641_s2, %s2641_s2 }
  0xf9   :  { %p2648_p2 = por %p2647_p1, %p2646_p0 }
  0xfb   :  { %p2649_p3 = pnand %p2648_p2, %p2642_p13 }
  0xfd   :  { %2652 = shalt.err (!%p2649_p3)
}
  0xfe   :  { %324 = dma.hbm_to_vmem [thread:$0]  %s3356_s19, 2048, %s319_s4, [#allocation36], %s3207_s16, %s3207_s16, %s3208_s9  }
  0xff   :  { %s2653_s30 = scalar_lea.hbm %s3366_s8, 16 }
 0x100   :  { %p2654_p4 = scmp.ne.s32.totalorder %s3366_s8, %s2653_s30  ;;  %p2657_p5 = scmp.lt.u32.totalorder %s2653_s30, %s3366_s8 }
 0x102   :  { %p2659_p6 = pnand %p2657_p5, %p2654_p4 }
 0x104   :  { %2662 = shalt.err (!%p2659_p6)
}
 0x105   :  { %s2663_s7 = scalar_lea.vmem %s342_s1, 16  ;;  %s2667_s10 = scalar_lea.vmem %s342_s1, 32 }
 0x106   :  { %p2664_p7 = scmp.ne.s32.totalorder %s342_s1, %s2663_s7  ;;  %p2668_p8 = scmp.lt.s32.totalorder %s342_s1, %s342_s1 }
 0x107   :  { %p2669_p9 = scmp.lt.s32.totalorder %s2667_s10, %s2663_s7 }
 0x109   :  { %p2670_p10 = por %p2669_p9, %p2668_p8 }
 0x10b   :  { %p2671_p11 = pnand %p2670_p10, %p2664_p7 }
 0x10d   :  { %2674 = shalt.err (!%p2671_p11)
}
 0x10e   :  { %344 = dma.hbm_to_vmem [thread:$0]  %s3366_s8, 16, %s342_s1, [#allocation39]  }
 0x10f   :  { %s3219_s24 = smov [#allocation41]   ;;  %s3220_s25 = smov [#allocation44]  }
 0x110   :  { %s360_s19 = sshll.u32 %s3219_s24, 4  ;;  %s383_s11 = sshll.u32 %s3220_s25, 4  ;;  %s361_s19 = int_to_ptr.vmem [resolvable:$true] %s360_s19  ;;  %s384_s11 = int_to_ptr.vmem [resolvable:$true] %s383_s11 }
 0x111   :  { %s2675_s15 = scalar_lea.hbm %s3376_s29, 2048 }
 0x112   :  { %p2676_p12 = scmp.ne.s32.totalorder %s3376_s29, %s2675_s15  ;;  %p2679_p13 = scmp.lt.u32.totalorder %s2675_s15, %s3376_s29 }
 0x114   :  { %p2681_p0 = pnand %p2679_p13, %p2676_p12 }
 0x116   :  { %2684 = shalt.err (!%p2681_p0)
}
 0x117   :  { %s2685_s6 = scalar_lea.vmem %s361_s19, 2048  ;;  %p2690_p2 = scmp.lt.s32.totalorder %s361_s19, %s361_s19 }
 0x118   :  { %p2686_p1 = scmp.ne.s32.totalorder %s361_s19, %s2685_s6  ;;  %p2691_p3 = scmp.lt.s32.totalorder %s2685_s6, %s2685_s6 }
 0x11a   :  { %p2692_p4 = por %p2691_p3, %p2690_p2 }
 0x11c   :  { %p2693_p5 = pnand %p2692_p4, %p2686_p1 }
 0x11e   :  { %2696 = shalt.err (!%p2693_p5)
}
 0x11f   :  { %366 = dma.hbm_to_vmem [thread:$0]  %s3376_s29, 2048, %s361_s19, [#allocation42], %s3207_s16, %s3207_s16, %s3208_s9  }
 0x120   :  { %s2697_s8 = scalar_lea.hbm %s3386_s21, 16 }
 0x121   :  { %p2698_p6 = scmp.ne.s32.totalorder %s3386_s21, %s2697_s8  ;;  %p2701_p7 = scmp.lt.u32.totalorder %s2697_s8, %s3386_s21 }
 0x123   :  { %p2703_p8 = pnand %p2701_p7, %p2698_p6 }
 0x125   :  { %2706 = shalt.err (!%p2703_p8)
}
 0x126   :  { %s2707_s18 = scalar_lea.vmem %s384_s11, 16  ;;  %s2711_s22 = scalar_lea.vmem %s384_s11, 32 }
 0x127   :  { %p2708_p9 = scmp.ne.s32.totalorder %s384_s11, %s2707_s18  ;;  %p2712_p10 = scmp.lt.s32.totalorder %s384_s11, %s384_s11 }
 0x128   :  { %p2713_p11 = scmp.lt.s32.totalorder %s2711_s22, %s2707_s18 }
 0x12a   :  { %p2714_p12 = por %p2713_p11, %p2712_p10 }
 0x12c   :  { %p2715_p13 = pnand %p2714_p12, %p2708_p9 }
 0x12e   :  { %2718 = shalt.err (!%p2715_p13)
}
 0x12f   :  { %s3711_s23 = sld [smem:[#allocation71_spill]]  ;;  %s3221_s3 = smov [#allocation2]  }
 0x130   :  { %386 = dma.hbm_to_vmem [thread:$0]  %s3386_s21, 16, %s384_s11, [#allocation45]  }
 0x131   :  { %s95_s29 = sshll.u32 %s3221_s3, 4  ;;  %s3222_s20 = smov [#allocation7]   ;;  %s96_s29 = int_to_ptr.vmem [resolvable:$true] %s95_s29 }
 0x132   :  { %s115_s26 = sshll.u32 %s3222_s20, 4  ;;  %s116_s26 = int_to_ptr.vmem [resolvable:$true] %s115_s26 }
 0x135   :  { %s2719_s0 = scalar_lea.hbm %s3711_s23, 128 }
 0x136   :  { %p2720_p0 = scmp.ne.s32.totalorder %s3711_s23, %s2719_s0  ;;  %p2723_p1 = scmp.lt.u32.totalorder %s2719_s0, %s3711_s23 }
 0x138   :  { %p2725_p2 = pnand %p2723_p1, %p2720_p0 }
 0x13a   :  { %2728 = shalt.err (!%p2725_p2)
}
 0x13b   :  { %s2729_s28 = scalar_lea.vmem %s96_s29, 128  ;;  %p2734_p4 = scmp.lt.s32.totalorder %s96_s29, %s96_s29 }
 0x13c   :  { %p2730_p3 = scmp.ne.s32.totalorder %s96_s29, %s2729_s28  ;;  %p2735_p5 = scmp.lt.s32.totalorder %s2729_s28, %s2729_s28 }
 0x13e   :  { %p2736_p6 = por %p2735_p5, %p2734_p4 }
 0x140   :  { %p2737_p7 = pnand %p2736_p6, %p2730_p3 }
 0x142   :  { %2740 = shalt.err (!%p2737_p7)
}
 0x143   :  { %s3712_s21 = sld [smem:[#allocation72_spill]] }
 0x144   :  { %98 = dma.hbm_to_vmem [thread:$0]  %s3711_s23, 128, %s96_s29, [#allocation3]  }
 0x149   :  { %s2741_s4 = scalar_lea.hbm %s3712_s21, 128 }
 0x14a   :  { %p2742_p8 = scmp.ne.s32.totalorder %s3712_s21, %s2741_s4  ;;  %p2745_p9 = scmp.lt.u32.totalorder %s2741_s4, %s3712_s21 }
 0x14c   :  { %p2747_p10 = pnand %p2745_p9, %p2742_p8 }
 0x14e   :  { %2750 = shalt.err (!%p2747_p10)
}
 0x14f   :  { %s2751_s14 = scalar_lea.vmem %s116_s26, 128  ;;  %p2756_p12 = scmp.lt.s32.totalorder %s116_s26, %s116_s26 }
 0x150   :  { %p2752_p11 = scmp.ne.s32.totalorder %s116_s26, %s2751_s14  ;;  %p2757_p13 = scmp.lt.s32.totalorder %s2751_s14, %s2751_s14 }
 0x152   :  { %p2758_p0 = por %p2757_p13, %p2756_p12 }
 0x154   :  { %p2759_p1 = pnand %p2758_p0, %p2752_p11 }
 0x156   :  { %2762 = shalt.err (!%p2759_p1)
}
 0x157   :  { %s3713_s1 = sld [smem:[#allocation73_spill]]  ;;  %s3223_s17 = smov [#allocation10]  }
 0x158   :  { %118 = dma.hbm_to_vmem [thread:$0]  %s3712_s21, 128, %s116_s26, [#allocation6]  }
 0x159   :  { %s136_s2 = sshll.u32 %s3223_s17, 4  ;;  %s3224_s30 = smov [#allocation13]   ;;  %s137_s2 = int_to_ptr.vmem [resolvable:$true] %s136_s2 }
 0x15a   :  { %s159_s7 = sshll.u32 %s3224_s30, 4  ;;  %s160_s7 = int_to_ptr.vmem [resolvable:$true] %s159_s7 }
 0x15d   :  { %s2763_s10 = scalar_lea.hbm %s3713_s1, 2048 }
 0x15e   :  { %p2764_p2 = scmp.ne.s32.totalorder %s3713_s1, %s2763_s10  ;;  %p2767_p3 = scmp.lt.u32.totalorder %s2763_s10, %s3713_s1 }
 0x160   :  { %p2769_p4 = pnand %p2767_p3, %p2764_p2 }
 0x162   :  { %2772 = shalt.err (!%p2769_p4)
}
 0x163   :  { %s2773_s24 = scalar_lea.vmem %s137_s2, 2048  ;;  %p2778_p6 = scmp.lt.s32.totalorder %s137_s2, %s137_s2 }
 0x164   :  { %p2774_p5 = scmp.ne.s32.totalorder %s137_s2, %s2773_s24  ;;  %p2779_p7 = scmp.lt.s32.totalorder %s2773_s24, %s2773_s24 }
 0x166   :  { %p2780_p8 = por %p2779_p7, %p2778_p6 }
 0x168   :  { %p2781_p9 = pnand %p2780_p8, %p2774_p5 }
 0x16a   :  { %2784 = shalt.err (!%p2781_p9)
}
 0x16b   :  { %s3714_s19 = sld [smem:[#allocation74_spill]] }
 0x16c   :  { %142 = dma.hbm_to_vmem [thread:$0]  %s3713_s1, 2048, %s137_s2, [#allocation9], %s3207_s16, %s3207_s16, %s3208_s9  }
 0x171   :  { %s2785_s25 = scalar_lea.hbm %s3714_s19, 16 }
 0x172   :  { %p2786_p10 = scmp.ne.s32.totalorder %s3714_s19, %s2785_s25  ;;  %p2789_p11 = scmp.lt.u32.totalorder %s2785_s25, %s3714_s19 }
 0x174   :  { %p2791_p12 = pnand %p2789_p11, %p2786_p10 }
 0x176   :  { %2794 = shalt.err (!%p2791_p12)
}
 0x177   :  { %s2795_s11 = scalar_lea.vmem %s160_s7, 16  ;;  %s2799_s15 = scalar_lea.vmem %s160_s7, 32 }
 0x178   :  { %p2796_p13 = scmp.ne.s32.totalorder %s160_s7, %s2795_s11  ;;  %p2800_p0 = scmp.lt.s32.totalorder %s160_s7, %s160_s7 }
 0x179   :  { %p2801_p1 = scmp.lt.s32.totalorder %s2799_s15, %s2795_s11 }
 0x17b   :  { %p2802_p2 = por %p2801_p1, %p2800_p0 }
 0x17d   :  { %p2803_p3 = pnand %p2802_p2, %p2796_p13 }
 0x17f   :  { %2806 = shalt.err (!%p2803_p3)
}
 0x180   :  { %s3715_s6 = sld [smem:[#allocation75_spill]]  ;;  %s3225_s8 = smov [#allocation16]  }
 0x181   :  { %162 = dma.hbm_to_vmem [thread:$0]  %s3714_s19, 16, %s160_s7, [#allocation12]  }
 0x182   :  { %s178_s18 = sshll.u32 %s3225_s8, 4  ;;  %s3226_s22 = smov [#allocation19]   ;;  %s179_s18 = int_to_ptr.vmem [resolvable:$true] %s178_s18 }
 0x183   :  { %s201_s23 = sshll.u32 %s3226_s22, 4  ;;  %s202_s23 = int_to_ptr.vmem [resolvable:$true] %s201_s23 }
 0x186   :  { %s2807_s3 = scalar_lea.hbm %s3715_s6, 2048 }
 0x187   :  { %p2808_p4 = scmp.ne.s32.totalorder %s3715_s6, %s2807_s3  ;;  %p2811_p5 = scmp.lt.u32.totalorder %s2807_s3, %s3715_s6 }
 0x189   :  { %p2813_p6 = pnand %p2811_p5, %p2808_p4 }
 0x18b   :  { %2816 = shalt.err (!%p2813_p6)
}
 0x18c   :  { %s2817_s29 = scalar_lea.vmem %s179_s18, 2048  ;;  %p2822_p8 = scmp.lt.s32.totalorder %s179_s18, %s179_s18 }
 0x18d   :  { %p2818_p7 = scmp.ne.s32.totalorder %s179_s18, %s2817_s29  ;;  %p2823_p9 = scmp.lt.s32.totalorder %s2817_s29, %s2817_s29 }
 0x18f   :  { %p2824_p10 = por %p2823_p9, %p2822_p8 }
 0x191   :  { %p2825_p11 = pnand %p2824_p10, %p2818_p7 }
 0x193   :  { %2828 = shalt.err (!%p2825_p11)
}
 0x194   :  { %s3716_s20 = sld [smem:[#allocation76_spill]] }
 0x195   :  { %184 = dma.hbm_to_vmem [thread:$0]  %s3715_s6, 2048, %s179_s18, [#allocation15], %s3207_s16, %s3207_s16, %s3208_s9  }
 0x19a   :  { %s2829_s26 = scalar_lea.hbm %s3716_s20, 16 }
 0x19b   :  { %p2830_p12 = scmp.ne.s32.totalorder %s3716_s20, %s2829_s26  ;;  %p2833_p13 = scmp.lt.u32.totalorder %s2829_s26, %s3716_s20 }
 0x19d   :  { %p2835_p0 = pnand %p2833_p13, %p2830_p12 }
 0x19f   :  { %2838 = shalt.err (!%p2835_p0)
}
 0x1a0   :  { %s2839_s0 = scalar_lea.vmem %s202_s23, 16  ;;  %s2843_s28 = scalar_lea.vmem %s202_s23, 32 }
 0x1a1   :  { %p2840_p1 = scmp.ne.s32.totalorder %s202_s23, %s2839_s0  ;;  %p2844_p2 = scmp.lt.s32.totalorder %s202_s23, %s202_s23 }
 0x1a2   :  { %p2845_p3 = scmp.lt.s32.totalorder %s2843_s28, %s2839_s0 }
 0x1a4   :  { %p2846_p4 = por %p2845_p3, %p2844_p2 }
 0x1a6   :  { %p2847_p5 = pnand %p2846_p4, %p2840_p1 }
 0x1a8   :  { %2850 = shalt.err (!%p2847_p5)
}
 0x1a9   :  { %s3717_s21 = sld [smem:[#allocation77_spill]]  ;;  %s3227_s4 = smov [#allocation22]  }
 0x1aa   :  { %204 = dma.hbm_to_vmem [thread:$0]  %s3716_s20, 16, %s202_s23, [#allocation18]  }
 0x1ab   :  { %s220_s14 = sshll.u32 %s3227_s4, 4  ;;  %s3228_s1 = smov [#allocation25]   ;;  %s221_s14 = int_to_ptr.vmem [resolvable:$true] %s220_s14 }
 0x1ac   :  { %s242_s17 = sshll.u32 %s3228_s1, 4  ;;  %s3518_s17 = int_to_ptr.vmem [resolvable:$true] %s242_s17 }
 0x1af   :  { %s2851_s2 = scalar_lea.hbm %s3717_s21, 2048 }
 0x1b0   :  { %p2852_p6 = scmp.ne.s32.totalorder %s3717_s21, %s2851_s2  ;;  %p2855_p7 = scmp.lt.u32.totalorder %s2851_s2, %s3717_s21 }
 0x1b2   :  { %p2857_p8 = pnand %p2855_p7, %p2852_p6 }
 0x1b4   :  { %2860 = shalt.err (!%p2857_p8)
}
 0x1b5   :  { %s2861_s30 = scalar_lea.vmem %s221_s14, 2048  ;;  %p2866_p10 = scmp.lt.s32.totalorder %s221_s14, %s221_s14 }
 0x1b6   :  { %p2862_p9 = scmp.ne.s32.totalorder %s221_s14, %s2861_s30  ;;  %p2867_p11 = scmp.lt.s32.totalorder %s2861_s30, %s2861_s30 }
 0x1b8   :  { %p2868_p12 = por %p2867_p11, %p2866_p10 }
 0x1ba   :  { %p2869_p13 = pnand %p2868_p12, %p2862_p9 }
 0x1bc   :  { %2872 = shalt.err (!%p2869_p13)
}
 0x1bd   :  { %s3718_s7 = sld [smem:[#allocation78_spill]] }
 0x1be   :  { %226 = dma.hbm_to_vmem [thread:$0]  %s3717_s21, 2048, %s221_s14, [#allocation21], %s3207_s16, %s3207_s16, %s3208_s9  }
 0x1c3   :  { %s2873_s10 = scalar_lea.hbm %s3718_s7, 2048 }
 0x1c4   :  { %p2874_p0 = scmp.ne.s32.totalorder %s3718_s7, %s2873_s10  ;;  %p2877_p1 = scmp.lt.u32.totalorder %s2873_s10, %s3718_s7 }
 0x1c6   :  { %p2879_p2 = pnand %p2877_p1, %p2874_p0 }
 0x1c8   :  { %2882 = shalt.err (!%p2879_p2)
}
 0x1c9   :  { %s2883_s24 = scalar_lea.vmem %s3518_s17, 2048  ;;  %p2888_p4 = scmp.lt.s32.totalorder %s3518_s17, %s3518_s17 }
 0x1ca   :  { %p2884_p3 = scmp.ne.s32.totalorder %s3518_s17, %s2883_s24  ;;  %p2889_p5 = scmp.lt.s32.totalorder %s2883_s24, %s2883_s24 }
 0x1cc   :  { %p2890_p6 = por %p2889_p5, %p2888_p4 }
 0x1ce   :  { %p2891_p7 = pnand %p2890_p6, %p2884_p3 }
 0x1d0   :  { %2894 = shalt.err (!%p2891_p7)
}
 0x1d1   :  { %s3719_s19 = sld [smem:[#allocation79_spill]]  ;;  %s3229_s25 = smov [#allocation28]  }
 0x1d2   :  { %248 = dma.hbm_to_vmem [thread:$0]  %s3718_s7, 2048, %s3518_s17, [#allocation24], %s3207_s16, %s3207_s16, %s3208_s9  }
 0x1d3   :  { %s264_s11 = sshll.u32 %s3229_s25, 4  ;;  %s3230_s15 = smov [#allocation31]   ;;  %s265_s11 = int_to_ptr.vmem [resolvable:$true] %s264_s11 }
 0x1d4   :  { %s289_s6 = sshll.u32 %s3230_s15, 4  ;;  %s290_s6 = int_to_ptr.vmem [resolvable:$true] %s289_s6 }
 0x1d7   :  { %s2895_s8 = scalar_lea.hbm %s3719_s19, 2048 }
 0x1d8   :  { %p2896_p8 = scmp.ne.s32.totalorder %s3719_s19, %s2895_s8  ;;  %p2899_p9 = scmp.lt.u32.totalorder %s2895_s8, %s3719_s19 }
 0x1da   :  { %p2901_p10 = pnand %p2899_p9, %p2896_p8 }
 0x1dc   :  { %2904 = shalt.err (!%p2901_p10)
}
 0x1dd   :  { %s2905_s18 = scalar_lea.vmem %s265_s11, 2048  ;;  %p2910_p12 = scmp.lt.s32.totalorder %s265_s11, %s265_s11 }
 0x1de   :  { %p2906_p11 = scmp.ne.s32.totalorder %s265_s11, %s2905_s18  ;;  %p2911_p13 = scmp.lt.s32.totalorder %s2905_s18, %s2905_s18 }
 0x1e0   :  { %p2912_p0 = por %p2911_p13, %p2910_p12 }
 0x1e2   :  { %p2913_p1 = pnand %p2912_p0, %p2906_p11 }
 0x1e4   :  { %2916 = shalt.err (!%p2913_p1)
}
 0x1e5   :  { %s3720_s22 = sld [smem:[#allocation80_spill]] }
 0x1e6   :  { %270 = dma.hbm_to_vmem [thread:$0]  %s3719_s19, 2048, %s265_s11, [#allocation27], %s3207_s16, %s3207_s16, %s3208_s9  }
 0x1eb   :  { %s2917_s23 = scalar_lea.hbm %s3720_s22, 16 }
 0x1ec   :  { %p2918_p2 = scmp.ne.s32.totalorder %s3720_s22, %s2917_s23  ;;  %p2921_p3 = scmp.lt.u32.totalorder %s2917_s23, %s3720_s22 }
 0x1ee   :  { %p2923_p4 = pnand %p2921_p3, %p2918_p2 }
 0x1f0   :  { %2926 = shalt.err (!%p2923_p4)
}
 0x1f1   :  { %s2927_s3 = scalar_lea.vmem %s290_s6, 16  ;;  %s2931_s29 = scalar_lea.vmem %s290_s6, 32 }
 0x1f2   :  { %p2928_p5 = scmp.ne.s32.totalorder %s290_s6, %s2927_s3  ;;  %p2932_p6 = scmp.lt.s32.totalorder %s290_s6, %s290_s6 }
 0x1f3   :  { %p2933_p7 = scmp.lt.s32.totalorder %s2931_s29, %s2927_s3 }
 0x1f5   :  { %p2934_p8 = por %p2933_p7, %p2932_p6 }
 0x1f7   :  { %p2935_p9 = pnand %p2934_p8, %p2928_p5 }
 0x1f9   :  { %2938 = shalt.err (!%p2935_p9)
}
 0x1fa   :  { %s3721_s20 = sld [smem:[#allocation81_spill]]  ;;  %s3231_s26 = smov [#allocation34]  }
 0x1fb   :  { %292 = dma.hbm_to_vmem [thread:$0]  %s3720_s22, 16, %s290_s6, [#allocation30]  }
 0x1fc   :  { %s309_s16 = sshll.u32 %s3231_s26, 4  ;;  %s3232_s9 = smov [#allocation37]   ;;  %s310_s16 = int_to_ptr.vmem [resolvable:$true] %s309_s16 }
 0x1fd   :  { %s331_s0 = sshll.u32 %s3232_s9, 4  ;;  %s332_s0 = int_to_ptr.vmem [resolvable:$true] %s331_s0 }
 0x200   :  { %s2939_s28 = scalar_lea.hbm %s3721_s20, 16 }
 0x201   :  { %p2940_p10 = scmp.ne.s32.totalorder %s3721_s20, %s2939_s28  ;;  %p2943_p11 = scmp.lt.u32.totalorder %s2939_s28, %s3721_s20 }
 0x203   :  { %p2945_p12 = pnand %p2943_p11, %p2940_p10 }
 0x205   :  { %2948 = shalt.err (!%p2945_p12)
}
 0x206   :  { %s2949_s21 = scalar_lea.vmem %s310_s16, 16  ;;  %s2953_s4 = scalar_lea.vmem %s310_s16, 32 }
 0x207   :  { %p2950_p13 = scmp.ne.s32.totalorder %s310_s16, %s2949_s21  ;;  %p2954_p0 = scmp.lt.s32.totalorder %s310_s16, %s310_s16 }
 0x208   :  { %p2955_p1 = scmp.lt.s32.totalorder %s2953_s4, %s2949_s21 }
 0x20a   :  { %p2956_p2 = por %p2955_p1, %p2954_p0 }
 0x20c   :  { %p2957_p3 = pnand %p2956_p2, %p2950_p13 }
 0x20e   :  { %2960 = shalt.err (!%p2957_p3)
}
 0x20f   :  { %s3722_s14 = sld [smem:[#allocation82_spill]] }
 0x210   :  { %312 = dma.hbm_to_vmem [thread:$0]  %s3721_s20, 16, %s310_s16, [#allocation33]  }
 0x215   :  { %s2961_s1 = scalar_lea.hbm %s3722_s14, 16 }
 0x216   :  { %p2962_p4 = scmp.ne.s32.totalorder %s3722_s14, %s2961_s1  ;;  %p2965_p5 = scmp.lt.u32.totalorder %s2961_s1, %s3722_s14 }
 0x218   :  { %p2967_p6 = pnand %p2965_p5, %p2962_p4 }
 0x21a   :  { %2970 = shalt.err (!%p2967_p6)
}
 0x21b   :  { %s2971_s17 = scalar_lea.vmem %s332_s0, 16  ;;  %s2975_s2 = scalar_lea.vmem %s332_s0, 32 }
 0x21c   :  { %p2972_p7 = scmp.ne.s32.totalorder %s332_s0, %s2971_s17  ;;  %p2976_p8 = scmp.lt.s32.totalorder %s332_s0, %s332_s0 }
 0x21d   :  { %p2977_p9 = scmp.lt.s32.totalorder %s2975_s2, %s2971_s17 }
 0x21f   :  { %p2978_p10 = por %p2977_p9, %p2976_p8 }
 0x221   :  { %p2979_p11 = pnand %p2978_p10, %p2972_p7 }
 0x223   :  { %2982 = shalt.err (!%p2979_p11)
}
 0x224   :  { %s3723_s30 = sld [smem:[#allocation83_spill]]  ;;  %s3233_s7 = smov [#allocation40]  }
 0x225   :  { %334 = dma.hbm_to_vmem [thread:$0]  %s3722_s14, 16, %s332_s0, [#allocation36]  }
 0x226   :  { %s351_s10 = sshll.u32 %s3233_s7, 4  ;;  %s3234_s24 = smov [#allocation43]   ;;  %s352_s10 = int_to_ptr.vmem [resolvable:$true] %s351_s10 }
 0x227   :  { %s373_s19 = sshll.u32 %s3234_s24, 4  ;;  %s374_s19 = int_to_ptr.vmem [resolvable:$true] %s373_s19 }
 0x22a   :  { %s2983_s25 = scalar_lea.hbm %s3723_s30, 16 }
 0x22b   :  { %p2984_p12 = scmp.ne.s32.totalorder %s3723_s30, %s2983_s25  ;;  %p2987_p13 = scmp.lt.u32.totalorder %s2983_s25, %s3723_s30 }
 0x22d   :  { %p2989_p0 = pnand %p2987_p13, %p2984_p12 }
 0x22f   :  { %2992 = shalt.err (!%p2989_p0)
}
 0x230   :  { %s2993_s11 = scalar_lea.vmem %s352_s10, 16  ;;  %s2997_s15 = scalar_lea.vmem %s352_s10, 32 }
 0x231   :  { %p2994_p1 = scmp.ne.s32.totalorder %s352_s10, %s2993_s11  ;;  %p2998_p2 = scmp.lt.s32.totalorder %s352_s10, %s352_s10 }
 0x232   :  { %p2999_p3 = scmp.lt.s32.totalorder %s2997_s15, %s2993_s11 }
 0x234   :  { %p3000_p4 = por %p2999_p3, %p2998_p2 }
 0x236   :  { %p3001_p5 = pnand %p3000_p4, %p2994_p1 }
 0x238   :  { %3004 = shalt.err (!%p3001_p5)
}
 0x239   :  { %s3724_s6 = sld [smem:[#allocation84_spill]] }
 0x23a   :  { %354 = dma.hbm_to_vmem [thread:$0]  %s3723_s30, 16, %s352_s10, [#allocation39]  }
 0x23f   :  { %s3005_s8 = scalar_lea.hbm %s3724_s6, 16 }
 0x240   :  { %p3006_p6 = scmp.ne.s32.totalorder %s3724_s6, %s3005_s8  ;;  %p3009_p7 = scmp.lt.u32.totalorder %s3005_s8, %s3724_s6 }
 0x242   :  { %p3011_p8 = pnand %p3009_p7, %p3006_p6 }
 0x244   :  { %3014 = shalt.err (!%p3011_p8)
}
 0x245   :  { %s3015_s18 = scalar_lea.vmem %s374_s19, 16  ;;  %s3019_s22 = scalar_lea.vmem %s374_s19, 32 }
 0x246   :  { %p3016_p9 = scmp.ne.s32.totalorder %s374_s19, %s3015_s18  ;;  %p3020_p10 = scmp.lt.s32.totalorder %s374_s19, %s374_s19 }
 0x247   :  { %p3021_p11 = scmp.lt.s32.totalorder %s3019_s22, %s3015_s18 }
 0x249   :  { %p3022_p12 = por %p3021_p11, %p3020_p10 }
 0x24b   :  { %p3023_p13 = pnand %p3022_p12, %p3016_p9 }
 0x24d   :  { %3026 = shalt.err (!%p3023_p13)
}
 0x24e   :  { %s3725_s23 = sld [smem:[#allocation85_spill]]  ;;  %s3235_s3 = smov [#allocation46]  }
 0x24f   :  { %376 = dma.hbm_to_vmem [thread:$0]  %s3724_s6, 16, %s374_s19, [#allocation42]  }
 0x250   :  { %s393_s29 = sshll.u32 %s3235_s3, 4  ;;  %s394_s29 = int_to_ptr.vmem [resolvable:$true] %s393_s29 }
 0x254   :  { %s3027_s20 = scalar_lea.hbm %s3725_s23, 16 }
 0x255   :  { %p3028_p0 = scmp.ne.s32.totalorder %s3725_s23, %s3027_s20  ;;  %p3031_p1 = scmp.lt.u32.totalorder %s3027_s20, %s3725_s23 }
 0x257   :  { %p3033_p2 = pnand %p3031_p1, %p3028_p0 }
 0x259   :  { %3036 = shalt.err (!%p3033_p2)
}
 0x25a   :  { %s3037_s26 = scalar_lea.vmem %s394_s29, 16  ;;  %s3041_s16 = scalar_lea.vmem %s394_s29, 32 }
 0x25b   :  { %p3038_p3 = scmp.ne.s32.totalorder %s394_s29, %s3037_s26  ;;  %p3042_p4 = scmp.lt.s32.totalorder %s394_s29, %s394_s29 }
 0x25c   :  { %p3043_p5 = scmp.lt.s32.totalorder %s3041_s16, %s3037_s26 }
 0x25e   :  { %p3044_p6 = por %p3043_p5, %p3042_p4 }
 0x260   :  { %p3045_p7 = pnand %p3044_p6, %p3038_p3 }
 0x262   :  { %3048 = shalt.err (!%p3045_p7)
}
 0x263   :  { %396 = dma.hbm_to_vmem [thread:$0]  %s3725_s23, 16, %s394_s29, [#allocation45]  }
 0x264   :  { %3137 = dma.done.wait [#allocation3], 128  }
 0x265   :  { %3138 = vsyncadd [#allocation3], 4294967168 }
 0x266   :  { %3139 = dma.done.wait [#allocation6], 256  }
 0x267   :  { %3140 = vsyncadd [#allocation6], 4294967040 }
 0x268   :  { %3141 = dma.done.wait [#allocation9], 4096  }
 0x269   :  { %3142 = vsyncadd [#allocation9], 4294963200 }
 0x26a   :  { %3143 = dma.done.wait [#allocation12], 32  }
 0x26b   :  { %3144 = vsyncadd [#allocation12], 4294967264 }
 0x26c   :  { %3145 = dma.done.wait [#allocation15], 2064  }
 0x26d   :  { %3146 = vsyncadd [#allocation15], 4294965232 }
 0x26e   :  { %3147 = dma.done.wait [#allocation18], 32  }
 0x26f   :  { %3148 = vsyncadd [#allocation18], 4294967264 }
 0x270   :  { %3149 = dma.done.wait [#allocation21], 2064  }
 0x271   :  { %3150 = vsyncadd [#allocation21], 4294965232 }
 0x272   :  { %3151 = dma.done.wait [#allocation24], 2064  }
 0x273   :  { %3152 = vsyncadd [#allocation24], 4294965232 }
 0x274   :  { %3153 = dma.done.wait [#allocation27], 2064  }
 0x275   :  { %3154 = vsyncadd [#allocation27], 4294965232 }
 0x276   :  { %3155 = dma.done.wait [#allocation30], 2064  }
 0x277   :  { %3156 = vsyncadd [#allocation30], 4294965232 }
 0x278   :  { %3157 = dma.done.wait [#allocation33], 32  }
 0x279   :  { %3158 = vsyncadd [#allocation33], 4294967264 }
 0x27a   :  { %3159 = dma.done.wait [#allocation36], 2064  }
 0x27b   :  { %3160 = vsyncadd [#allocation36], 4294965232 }
 0x27c   :  { %3161 = dma.done.wait [#allocation39], 32  }
 0x27d   :  { %3162 = vsyncadd [#allocation39], 4294967264 }
 0x27e   :  { %3163 = dma.done.wait [#allocation42], 2064  }
 0x27f   :  { %3164 = vsyncadd [#allocation42], 4294965232 }
 0x280   :  { %3165 = dma.done.wait [#allocation45], 32  }
 0x281   :  { %3166 = vsyncadd [#allocation45], 4294967264  ;;  %v3236_v0 = vmov 0.0|0.0   ;;  %vm3237_vm0 = vmmov 0   ;;  %v3238_v1 = vmov 0.0   ;;  %v503_v2 = vld [vmem:[#allocation10] sm:$0xff] }
 0x282   :  { %2109 = vmatprep.subr.bf16.mxu0 %v3236_v0  ;;  %2133 = vmatprep.subr.bf16.mxu1 %v3236_v0  ;;  %v504_v3 = vld [vmem:[#allocation10 + $0x8] sm:$0xff]  ;;  %v487_v4 = vld [vmem:[#allocation8] sm:$0xff]  ;;  %v505_v7 = vld [vmem:[#allocation10 + $0x10] sm:$0xff]  ;;  %s3239_s9 = smov [#allocation48]  }
 0x283   :  { %1826 = vmatprep.mubr.msk.f32.mxu0 %vm3237_vm0, %v3238_v1  ;;  %1861 = vmatprep.mubr.msk.f32.mxu1 %vm3237_vm0, %v3238_v1  ;;  %v2110_v5 = vpack.c.bf16 %v504_v3, %v503_v2  ;;  %v488_v6 = vld [vmem:[#allocation8 + $0x8] sm:$0xff]  ;;  %v506_v8 = vld [vmem:[#allocation10 + $0x18] sm:$0xff]  ;;  %v489_v10 = vld [vmem:[#allocation8 + $0x10] sm:$0xff]  ;;  %s1538_s0 = sshll.u32 %s3239_s9, 4  ;;  %s1539_s0 = int_to_ptr.vmem [resolvable:$true] %s1538_s0 }
 0x284   :  { %v2134_v9 = vpack.c.bf16 %v488_v6, %v487_v4  ;;  %v490_v11 = vld [vmem:[#allocation8 + $0x18] sm:$0xff]  ;;  %v2113_v12 = vpack.c.bf16 %v506_v8, %v505_v7  ;;  %v507_v14 = vld [vmem:[#allocation10 + $0x20] sm:$0xff]  ;;  %v508_v15 = vld [vmem:[#allocation10 + $0x28] sm:$0xff]  ;;  %s3049_s28 = scalar_lea.vmem %s1539_s0, 128  ;;  %p3054_p9 = scmp.lt.s32.totalorder %s1539_s0, %s1539_s0 }
 0x285   :  { %2111 = vmatpush3.bf16.msra.mxu0 %v2110_v5  ;;  %v2137_v13 = vpack.c.bf16 %v490_v11, %v489_v10  ;;  %v491_v16 = vld [vmem:[#allocation8 + $0x20] sm:$0xff]  ;;  %v492_v17 = vld [vmem:[#allocation8 + $0x28] sm:$0xff]  ;;  %v2116_v18 = vpack.c.bf16 %v508_v15, %v507_v14  ;;  %v509_v20 = vld [vmem:[#allocation10 + $0x30] sm:$0xff]  ;;  %p3050_p8 = scmp.ne.s32.totalorder %s1539_s0, %s3049_s28  ;;  %p3055_p10 = scmp.lt.s32.totalorder %s3049_s28, %s3049_s28 }
 0x286   :  { %2135 = vmatpush3.bf16.msra.mxu1 %v2134_v9  ;;  %2112 = vmatprep.subr.bf16.mxu0 %v3236_v0  ;;  %v2140_v19 = vpack.c.bf16 %v492_v17, %v491_v16  ;;  %v510_v21 = vld [vmem:[#allocation10 + $0x38] sm:$0xff]  ;;  %v493_v22 = vld [vmem:[#allocation8 + $0x30] sm:$0xff]  ;;  %v511_v26 = vld [vmem:[#allocation10 + $0x40] sm:$0xff] }
 0x287   :  { %2136 = vmatprep.subr.bf16.mxu1 %v3236_v0  ;;  %v494_v23 = vld [vmem:[#allocation8 + $0x38] sm:$0xff]  ;;  %v2119_v24 = vpack.c.bf16 %v510_v21, %v509_v20  ;;  %v512_v27 = vld [vmem:[#allocation10 + $0x48] sm:$0xff]  ;;  %v495_v28 = vld [vmem:[#allocation8 + $0x40] sm:$0xff]  ;;  %p3056_p11 = por %p3055_p10, %p3054_p9 }
 0x288   :  { %v2143_v25 = vpack.c.bf16 %v494_v23, %v493_v22  ;;  %v496_v29 = vld [vmem:[#allocation8 + $0x48] sm:$0xff]  ;;  %v2122_v30 = vpack.c.bf16 %v512_v27, %v511_v26  ;;  %v513_v32 = vld [vmem:[#allocation10 + $0x50] sm:$0xff]  ;;  %v514_v33 = vld [vmem:[#allocation10 + $0x58] sm:$0xff] }
 0x289   :  { %2114 = vmatpush3.bf16.msra.mxu0 %v2113_v12  ;;  %v2146_v31 = vpack.c.bf16 %v496_v29, %v495_v28  ;;  %v497_v34 = vld [vmem:[#allocation8 + $0x50] sm:$0xff]  ;;  %v498_v35 = vld [vmem:[#allocation8 + $0x58] sm:$0xff]  ;;  %v2125_v36 = vpack.c.bf16 %v514_v33, %v513_v32  ;;  %v515_v38 = vld [vmem:[#allocation10 + $0x60] sm:$0xff]  ;;  %p3057_p12 = pnand %p3056_p11, %p3050_p8 }
 0x28a   :  { %2138 = vmatpush3.bf16.msra.mxu1 %v2137_v13  ;;  %2115 = vmatprep.subr.bf16.mxu0 %v3236_v0  ;;  %v2149_v37 = vpack.c.bf16 %v498_v35, %v497_v34  ;;  %v516_v39 = vld [vmem:[#allocation10 + $0x68] sm:$0xff]  ;;  %v499_v40 = vld [vmem:[#allocation8 + $0x60] sm:$0xff]  ;;  %v517_v44 = vld [vmem:[#allocation10 + $0x70] sm:$0xff] }
 0x28b   :  { %2139 = vmatprep.subr.bf16.mxu1 %v3236_v0  ;;  %v500_v41 = vld [vmem:[#allocation8 + $0x68] sm:$0xff]  ;;  %v2128_v42 = vpack.c.bf16 %v516_v39, %v515_v38  ;;  %v518_v45 = vld [vmem:[#allocation10 + $0x78] sm:$0xff]  ;;  %v501_v46 = vld [vmem:[#allocation8 + $0x70] sm:$0xff] }
 0x28c   :  { %v2152_v43 = vpack.c.bf16 %v500_v41, %v499_v40  ;;  %v502_v47 = vld [vmem:[#allocation8 + $0x78] sm:$0xff]  ;;  %v2131_v48 = vpack.c.bf16 %v518_v45, %v517_v44  ;;  %v3590_v50 = vld [vmem:[#allocation5] sm:$0xff]  ;;  %v484_v51 = vld [vmem:[#allocation2] sm:$0xff] }
 0x28d   :  { %2117 = vmatpush3.bf16.msra.mxu0 %v2116_v18  ;;  %v2155_v49 = vpack.c.bf16 %v502_v47, %v501_v46  ;;  %v706_v52 = vld [vmem:[#allocation16] sm:$0xff]  ;;  %v707_v53 = vld [vmem:[#allocation16 + $0x8] sm:$0xff]  ;;  %v708_v55 = vld [vmem:[#allocation16 + $0x10] sm:$0xff] }
 0x28e   :  { %2141 = vmatpush3.bf16.msra.mxu1 %v2140_v19  ;;  %2118 = vmatprep.subr.bf16.mxu0 %v3236_v0  ;;  %v2158_v54 = vpack.c.bf16 %v707_v53, %v706_v52  ;;  %v709_v56 = vld [vmem:[#allocation16 + $0x18] sm:$0xff]  ;;  %v710_v58 = vld [vmem:[#allocation16 + $0x20] sm:$0xff]  ;;  %v711_v59 = vld [vmem:[#allocation16 + $0x28] sm:$0xff] }
 0x28f   :  { %2142 = vmatprep.subr.bf16.mxu1 %v3236_v0  ;;  %v2161_v57 = vpack.c.bf16 %v709_v56, %v708_v55  ;;  %v2164_v60 = vpack.c.bf16 %v711_v59, %v710_v58  ;;  %v712_v61 = vld [vmem:[#allocation16 + $0x30] sm:$0xff]  ;;  %v713_v62 = vld [vmem:[#allocation16 + $0x38] sm:$0xff]  ;;  %v714_v2 = vld [vmem:[#allocation16 + $0x40] sm:$0xff] }
 0x290   :  { %v2167_v63 = vpack.c.bf16 %v713_v62, %v712_v61  ;;  %v715_v3 = vld [vmem:[#allocation16 + $0x48] sm:$0xff]  ;;  %v716_v5 = vld [vmem:[#allocation16 + $0x50] sm:$0xff]  ;;  %v717_v6 = vld [vmem:[#allocation16 + $0x58] sm:$0xff] }
 0x291   :  { %2120 = vmatpush3.bf16.msra.mxu0 %v2119_v24  ;;  %v2170_v4 = vpack.c.bf16 %v715_v3, %v714_v2  ;;  %v2173_v7 = vpack.c.bf16 %v717_v6, %v716_v5  ;;  %v718_v8 = vld [vmem:[#allocation16 + $0x60] sm:$0xff]  ;;  %v719_v9 = vld [vmem:[#allocation16 + $0x68] sm:$0xff]  ;;  %v720_v11 = vld [vmem:[#allocation16 + $0x70] sm:$0xff] }
 0x292   :  { %2144 = vmatpush3.bf16.msra.mxu1 %v2143_v25  ;;  %2121 = vmatprep.subr.bf16.mxu0 %v3236_v0  ;;  %v2176_v10 = vpack.c.bf16 %v719_v9, %v718_v8  ;;  %v721_v12 = vld [vmem:[#allocation16 + $0x78] sm:$0xff]  ;;  %v932_v53 = vld [vmem:[#allocation25 + $0x8] sm:$0xff]  ;;  %v934_v59 = vld [vmem:[#allocation25 + $0x18] sm:$0xff] }
 0x293   :  { %2145 = vmatprep.subr.bf16.mxu1 %v3236_v0  ;;  %v2179_v13 = vpack.c.bf16 %v721_v12, %v720_v11  ;;  %v1624_v16 = vld [vmem:[#allocation11] ss:$0 sm:$0xff]  ;;  %v1626_v45 = vld [vmem:[#allocation14] ss:$0 sm:$0xff]  ;;  %v842_v61 = vld [vmem:[#allocation22 + $0x20] sm:$0xff] }
 0x294   :  { %v840_v55 = vld [vmem:[#allocation22 + $0x10] sm:$0xff]  ;;  %v841_v56 = vld [vmem:[#allocation22 + $0x18] sm:$0xff]  ;;  %v843_v62 = vld [vmem:[#allocation22 + $0x28] sm:$0xff] }
 0x295   :  { %2123 = vmatpush3.bf16.msra.mxu0 %v2122_v30  ;;  %v2185_v58 = vpack.c.bf16 %v841_v56, %v840_v55  ;;  %v2188_v2 = vpack.c.bf16 %v843_v62, %v842_v61  ;;  %v936_v3 = vld [vmem:[#allocation25 + $0x28] sm:$0xff]  ;;  %v845_v6 = vld [vmem:[#allocation22 + $0x38] sm:$0xff]  ;;  %v846_v11 = vld [vmem:[#allocation22 + $0x40] sm:$0xff] }
 0x296   :  { %2147 = vmatpush3.bf16.msra.mxu1 %v2146_v31  ;;  %2124 = vmatprep.subr.bf16.mxu0 %v3236_v0  ;;  %v844_v5 = vld [vmem:[#allocation22 + $0x30] sm:$0xff]  ;;  %v938_v9 = vld [vmem:[#allocation25 + $0x38] sm:$0xff]  ;;  %v847_v12 = vld [vmem:[#allocation22 + $0x48] sm:$0xff] }
 0x297   :  { %2148 = vmatprep.subr.bf16.mxu1 %v3236_v0  ;;  %v937_v8 = vld [vmem:[#allocation25 + $0x30] sm:$0xff]  ;;  %v1628_v61 = vld [vmem:[#allocation19] ss:$0 sm:$0xff]  ;;  %v1045_v62 = vld [vmem:[#allocation29] sm:$0xff] }
 0x299   :  { %2126 = vmatpush3.bf16.msra.mxu0 %v2125_v36 }
 0x29a   :  { %2150 = vmatpush3.bf16.msra.mxu1 %v2149_v37  ;;  %2127 = vmatprep.subr.bf16.mxu0 %v3236_v0 }
 0x29b   :  { %2151 = vmatprep.subr.bf16.mxu1 %v3236_v0 }
 0x29d   :  { %2129 = vmatpush3.bf16.msra.mxu0 %v2128_v42  ;;  %v1625_v42 = vld [vmem:[#allocation13] ss:$0 sm:$0xff] }
 0x29e   :  { %2153 = vmatpush3.bf16.msra.mxu1 %v2152_v43  ;;  %2130 = vmatprep.subr.bf16.mxu0 %v3236_v0 }
 0x29f   :  { %2154 = vmatprep.subr.bf16.mxu1 %v3236_v0 }
 0x2a1   :  { %2132 = vmatpush3.bf16.msra.mxu0 %v2131_v48  ;;  %v838_v48 = vld [vmem:[#allocation22] sm:$0xff] }
 0x2a2   :  { %2156 = vmatpush3.bf16.msra.mxu1 %v2155_v49  ;;  %2157 = vmatprep.subr.bf16.mxu0 %v3236_v0  ;;  %v839_v49 = vld [vmem:[#allocation22 + $0x8] sm:$0xff] }
 0x2a3   :  { %2181 = vmatprep.subr.bf16.mxu1 %v3236_v0  ;;  %v2182_v52 = vpack.c.bf16 %v839_v49, %v838_v48 }
 0x2a4   :  { %1827 = vmatmul.mubr.f32.vlgmr.msra.gmra.mrb[0].mxu0 %v3590_v50 }
 0x2a5   :  { %1862 = vmatmul.mubr.f32.vlgmr.msra.gmra.mrb[0].mxu1 %v484_v51  ;;  %1896 = vmatprep.mubr.msk.f32.mxu0 %vm3237_vm0, %v3238_v1  ;;  %v931_v51 = vld [vmem:[#allocation25] sm:$0xff] }
 0x2a6   :  { %1931 = vmatprep.mubr.msk.f32.mxu1 %vm3237_vm0, %v3238_v1  ;;  %2159 = vmatpush3.bf16.msra.mxu0 %v2158_v54  ;;  %v2206_v54 = vpack.c.bf16 %v932_v53, %v931_v51 }
 0x2a7   :  { %2160 = vmatprep.subr.bf16.mxu0 %v3236_v0  ;;  %2183 = vmatpush3.bf16.msra.mxu1 %v2182_v52 }
 0x2a8   :  { %2184 = vmatprep.subr.bf16.mxu1 %v3236_v0 }
 0x2aa   :  { %2162 = vmatpush3.bf16.msra.mxu0 %v2161_v57  ;;  %v933_v57 = vld [vmem:[#allocation25 + $0x10] sm:$0xff] }
 0x2ab   :  { %2163 = vmatprep.subr.bf16.mxu0 %v3236_v0  ;;  %2186 = vmatpush3.bf16.msra.mxu1 %v2185_v58 }
 0x2ac   :  { %2187 = vmatprep.subr.bf16.mxu1 %v3236_v0 }
 0x2ae   :  { %2165 = vmatpush3.bf16.msra.mxu0 %v2164_v60  ;;  %v2209_v60 = vpack.c.bf16 %v934_v59, %v933_v57 }
 0x2af   :  { %2166 = vmatprep.subr.bf16.mxu0 %v3236_v0  ;;  %2189 = vmatpush3.bf16.msra.mxu1 %v2188_v2  ;;  %v1046_v2 = vld [vmem:[#allocation29 + $0x8] sm:$0xff] }
 0x2b0   :  { %2190 = vmatprep.subr.bf16.mxu1 %v3236_v0 }
 0x2b2   :  { %2168 = vmatpush3.bf16.msra.mxu0 %v2167_v63  ;;  %v935_v63 = vld [vmem:[#allocation25 + $0x20] sm:$0xff] }
 0x2b3   :  { %2169 = vmatprep.subr.bf16.mxu0 %v3236_v0 }
 0x2b6   :  { %2171 = vmatpush3.bf16.msra.mxu0 %v2170_v4  ;;  %v2212_v4 = vpack.c.bf16 %v936_v3, %v935_v63  ;;  %v1029_v3 = vld [vmem:[#allocation28] sm:$0xff] }
 0x2b7   :  { %2172 = vmatprep.subr.bf16.mxu0 %v3236_v0 }
 0x2ba   :  { %2174 = vmatpush3.bf16.msra.mxu0 %v2173_v7  ;;  %v2191_v7 = vpack.c.bf16 %v845_v6, %v844_v5  ;;  %v1629_v6 = vld [vmem:[#allocation20] ss:$0 sm:$0xff] }
 0x2bb   :  { %2175 = vmatprep.subr.bf16.mxu0 %v3236_v0 }
 0x2bc   :  { %2192 = vmatpush3.bf16.msra.mxu1 %v2191_v7 }
 0x2bd   :  { %2193 = vmatprep.subr.bf16.mxu1 %v3236_v0 }
 0x2be   :  { %2177 = vmatpush3.bf16.msra.mxu0 %v2176_v10  ;;  %v2215_v10 = vpack.c.bf16 %v938_v9, %v937_v8  ;;  %v2230_v8 = vpack.c.bf16 %v1046_v2, %v1045_v62  ;;  %v486_v2 = vld [vmem:[#allocation7] sm:$0xff] }
 0x2bf   :  { %2178 = vmatprep.subr.bf16.mxu0 %v3236_v0 }
 0x2c2   :  { %2180 = vmatpush3.bf16.msra.mxu0 %v2179_v13  ;;  %v939_v13 = vld [vmem:[#allocation25 + $0x40] sm:$0xff] }
 0x2c3   :  { %2205 = vmatprep.subr.bf16.mxu0 %v3236_v0 }
 0x377   :  { %v585_v14 = vpop.f32.mrb[0].mxu0 }
 0x378   :  { %v655_v15 = vpop.f32.mrb[0].mxu1  ;;  %v1828_v17 = vpop.f32.mrb[1].mxu0 }
 0x379   :  { %v656_v18 = vadd.f32 %v655_v15, %v585_v14  ;;  %v1863_v19 = vpop.f32.mrb[1].mxu1  ;;  %v2194_v14 = vpack.c.bf16 %v847_v12, %v846_v11  ;;  %v940_v15 = vld [vmem:[#allocation25 + $0x48] sm:$0xff]  ;;  %v1048_v12 = vld [vmem:[#allocation29 + $0x18] sm:$0xff] }
 0x37a   :  { %v848_v17 = vld [vmem:[#allocation22 + $0x50] sm:$0xff] }
 0x37b   :  { %v666_v20 = vadd.f32 %v1624_v16, %v656_v18  ;;  %v2218_v16 = vpack.c.bf16 %v940_v15, %v939_v13  ;;  %2195 = vmatpush3.bf16.msra.mxu1 %v2194_v14  ;;  %v849_v18 = vld [vmem:[#allocation22 + $0x58] sm:$0xff] }
 0x37c   :  { %v941_v19 = vld [vmem:[#allocation25 + $0x50] sm:$0xff]  ;;  %2196 = vmatprep.subr.bf16.mxu1 %v3236_v0  ;;  %v1032_v14 = vld [vmem:[#allocation28 + $0x18] sm:$0xff] }
 0x37d   :  { %v667_v21 = vmax.f32 %v666_v20, 0.0  ;;  %v2197_v20 = vpack.c.bf16 %v849_v18, %v848_v17  ;;  %v1031_v13 = vld [vmem:[#allocation28 + $0x10] sm:$0xff]  ;;  %v1049_v17 = vld [vmem:[#allocation29 + $0x20] sm:$0xff]  ;;  %v1050_v18 = vld [vmem:[#allocation29 + $0x28] sm:$0xff] }
 0x37f   :  { %v668_v22 = vrot.slane %v667_v21, 4  ;;  %v675_v23 = vmul.f32 %v667_v21, %v667_v21  ;;  %2198 = vmatpush3.bf16.msra.mxu1 %v2197_v20  ;;  %v1034_v20 = vld [vmem:[#allocation28 + $0x28] sm:$0xff] }
 0x380   :  { %2199 = vmatprep.subr.bf16.mxu1 %v3236_v0 }
 0x381   :  { %v669_v24 = vadd.f32 %v668_v22, %v667_v21  ;;  %v676_v25 = vrot.slane %v675_v23, 4  ;;  %v850_v22 = vld [vmem:[#allocation22 + $0x60] sm:$0xff] }
 0x383   :  { %v670_v26 = vrot.slane %v669_v24, 2  ;;  %v677_v27 = vadd.f32 %v676_v25, %v675_v23  ;;  %v851_v23 = vld [vmem:[#allocation22 + $0x68] sm:$0xff] }
 0x384   :  { %v943_v25 = vld [vmem:[#allocation25 + $0x60] sm:$0xff] }
 0x385   :  { %v671_v28 = vadd.f32 %v670_v26, %v669_v24  ;;  %v678_v29 = vrot.slane %v677_v27, 2  ;;  %v944_v26 = vld [vmem:[#allocation25 + $0x68] sm:$0xff] }
 0x387   :  { %v672_v30 = vrot.slane %v671_v28, 1  ;;  %v679_v31 = vadd.f32 %v678_v29, %v677_v27  ;;  %v2200_v27 = vpack.c.bf16 %v851_v23, %v850_v22  ;;  %v852_v29 = vld [vmem:[#allocation22 + $0x70] sm:$0xff] }
 0x388   :  { %v1051_v23 = vld [vmem:[#allocation29 + $0x30] sm:$0xff] }
 0x389   :  { %v673_v32 = vadd.f32 %v672_v30, %v671_v28  ;;  %v680_v33 = vrot.slane %v679_v31, 1  ;;  %v2224_v28 = vpack.c.bf16 %v944_v26, %v943_v25  ;;  %v853_v30 = vld [vmem:[#allocation22 + $0x78] sm:$0xff]  ;;  %2201 = vmatpush3.bf16.msra.mxu1 %v2200_v27 }
 0x38a   :  { %2202 = vmatprep.subr.bf16.mxu1 %v3236_v0  ;;  %v1035_v26 = vld [vmem:[#allocation28 + $0x30] sm:$0xff]  ;;  %v1036_v27 = vld [vmem:[#allocation28 + $0x38] sm:$0xff] }
 0x38b   :  { %v674_v34 = vmul.f32 0.125, %v673_v32  ;;  %v681_v35 = vadd.f32 %v680_v33, %v679_v31  ;;  %v945_v31 = vld [vmem:[#allocation25 + $0x70] sm:$0xff]  ;;  %v946_v32 = vld [vmem:[#allocation25 + $0x78] sm:$0xff]  ;;  %v2203_v33 = vpack.c.bf16 %v853_v30, %v852_v29  ;;  %v1053_v29 = vld [vmem:[#allocation29 + $0x40] sm:$0xff] }
 0x38c   :  { %v1054_v30 = vld [vmem:[#allocation29 + $0x48] sm:$0xff] }
 0x38d   :  { %v682_v36 = vmul.f32 0.125, %v681_v35  ;;  %v683_v37 = vmul.f32 %v674_v34, %v674_v34  ;;  %v687_v41 = vsub.f32 %v667_v21, %v674_v34  ;;  %v942_v21 = vld [vmem:[#allocation25 + $0x58] sm:$0xff]  ;;  %v2227_v34 = vpack.c.bf16 %v946_v32, %v945_v31  ;;  %2204 = vmatpush3.bf16.msra.mxu1 %v2203_v33  ;;  %v1037_v32 = vld [vmem:[#allocation28 + $0x40] sm:$0xff]  ;;  %v1038_v33 = vld [vmem:[#allocation28 + $0x48] sm:$0xff] }
 0x38e   :  { %v2221_v24 = vpack.c.bf16 %v942_v21, %v941_v19  ;;  %2229 = vmatprep.subr.bf16.mxu1 %v3236_v0  ;;  %v1627_v35 = vld [vmem:[#allocation17] ss:$0 sm:$0xff]  ;;  %v1033_v19 = vld [vmem:[#allocation28 + $0x20] sm:$0xff]  ;;  %v2236_v21 = vpack.c.bf16 %v1050_v18, %v1049_v17  ;;  %v2242_v31 = vpack.c.bf16 %v1054_v30, %v1053_v29 }
 0x38f   :  { %v684_v38 = vsub.f32 %v682_v36, %v683_v37  ;;  %v694_v43 = vmul.f32 %v1625_v42, %v687_v41  ;;  %v2260_v22 = vpack.c.bf16 %v1034_v20, %v1033_v19  ;;  %v1256_v18 = vld [vmem:[#allocation35 + $0x40] sm:$0xff]  ;;  %v1257_v19 = vld [vmem:[#allocation35 + $0x48] sm:$0xff] }
 0x390   :  { %v2290_v20 = vpack.c.bf16 %v1257_v19, %v1256_v18  ;;  %v1393_v18 = vld [vmem:[#allocation41 + $0x68] sm:$0xff] }
 0x391   :  { %v685_v39 = vmax.f32 %v684_v38, 0.0 }
 0x393   :  { %v695_v40 = vadd.f32 1e-05, %v685_v39 }
 0x395   :  { %2395 = vrsqrt.f32 %v695_v40 }
 0x39f   :  { %v2396_v44 = vpop.eup %2395 }
 0x3a0   :  { %v697_v46 = vmul.f32 %v2396_v44, %v694_v43 }
 0x3a2   :  { %v705_v47 = vadd.f32 %v1626_v45, %v697_v46 }
 0x3a4   :  { %1897 = vmatmul.mubr.f32.vlgmr.msra.gmra.mrb[2].mxu0 %v705_v47 }
 0x3a5   :  { %1966 = vmatprep.mubr.msk.f32.mxu0 %vm3237_vm0, %v3238_v1  ;;  %2207 = vmatpush3.bf16.msra.mxu0 %v2206_v54 }
 0x3a6   :  { %2208 = vmatprep.subr.bf16.mxu0 %v3236_v0 }
 0x3a9   :  { %2210 = vmatpush3.bf16.msra.mxu0 %v2209_v60 }
 0x3aa   :  { %2211 = vmatprep.subr.bf16.mxu0 %v3236_v0 }
 0x3ad   :  { %2213 = vmatpush3.bf16.msra.mxu0 %v2212_v4  ;;  %v1030_v4 = vld [vmem:[#allocation28 + $0x8] sm:$0xff] }
 0x3ae   :  { %2214 = vmatprep.subr.bf16.mxu0 %v3236_v0  ;;  %v2254_v9 = vpack.c.bf16 %v1030_v4, %v1029_v3 }
 0x3b1   :  { %2216 = vmatpush3.bf16.msra.mxu0 %v2215_v10  ;;  %v1047_v10 = vld [vmem:[#allocation29 + $0x10] sm:$0xff] }
 0x3b2   :  { %2217 = vmatprep.subr.bf16.mxu0 %v3236_v0  ;;  %v2233_v15 = vpack.c.bf16 %v1048_v12, %v1047_v10  ;;  %v1250_v10 = vld [vmem:[#allocation35 + $0x10] sm:$0xff] }
 0x3b5   :  { %2219 = vmatpush3.bf16.msra.mxu0 %v2218_v16  ;;  %v2257_v16 = vpack.c.bf16 %v1032_v14, %v1031_v13  ;;  %v1252_v13 = vld [vmem:[#allocation35 + $0x20] sm:$0xff]  ;;  %v1253_v14 = vld [vmem:[#allocation35 + $0x28] sm:$0xff] }
 0x3b6   :  { %2220 = vmatprep.subr.bf16.mxu0 %v3236_v0 }
 0x3b9   :  { %2222 = vmatpush3.bf16.msra.mxu0 %v2221_v24  ;;  %v1052_v24 = vld [vmem:[#allocation29 + $0x38] sm:$0xff] }
 0x3ba   :  { %2223 = vmatprep.subr.bf16.mxu0 %v3236_v0  ;;  %v2239_v25 = vpack.c.bf16 %v1052_v24, %v1051_v23  ;;  %v1260_v24 = vld [vmem:[#allocation35 + $0x60] sm:$0xff] }
 0x3bd   :  { %2225 = vmatpush3.bf16.msra.mxu0 %v2224_v28  ;;  %v2263_v28 = vpack.c.bf16 %v1036_v27, %v1035_v26  ;;  %v1262_v27 = vld [vmem:[#allocation35 + $0x70] sm:$0xff] }
 0x3be   :  { %2226 = vmatprep.subr.bf16.mxu0 %v3236_v0 }
 0x3c1   :  { %2228 = vmatpush3.bf16.msra.mxu0 %v2227_v34  ;;  %v2266_v34 = vpack.c.bf16 %v1038_v33, %v1037_v32 }
 0x3c2   :  { %2253 = vmatprep.subr.bf16.mxu0 %v3236_v0 }
 0x477   :  { %v795_v36 = vpop.f32.mrb[2].mxu0 }
 0x478   :  { %v796_v37 = vadd.f32 %v1627_v35, %v795_v36  ;;  %v1898_v38 = vpop.f32.mrb[3].mxu0  ;;  %v1055_v35 = vld [vmem:[#allocation29 + $0x50] sm:$0xff]  ;;  %v1056_v36 = vld [vmem:[#allocation29 + $0x58] sm:$0xff] }
 0x479   :  { %v2245_v38 = vpack.c.bf16 %v1056_v36, %v1055_v35 }
 0x47a   :  { %v799_v39 = vmax.f32 %v796_v37, 0.0  ;;  %v1039_v37 = vld [vmem:[#allocation28 + $0x50] sm:$0xff] }
 0x47c   :  { %v800_v40 = vrot.slane %v799_v39, 4  ;;  %v807_v41 = vmul.f32 %v799_v39, %v799_v39 }
 0x47e   :  { %v801_v42 = vadd.f32 %v800_v40, %v799_v39  ;;  %v808_v43 = vrot.slane %v807_v41, 4  ;;  %v1057_v40 = vld [vmem:[#allocation29 + $0x60] sm:$0xff] }
 0x480   :  { %v802_v44 = vrot.slane %v801_v42, 2  ;;  %v809_v45 = vadd.f32 %v808_v43, %v807_v41  ;;  %v1058_v41 = vld [vmem:[#allocation29 + $0x68] sm:$0xff]  ;;  %v1041_v43 = vld [vmem:[#allocation28 + $0x60] sm:$0xff] }
 0x482   :  { %v803_v46 = vadd.f32 %v802_v44, %v801_v42  ;;  %v810_v47 = vrot.slane %v809_v45, 2  ;;  %v1042_v44 = vld [vmem:[#allocation28 + $0x68] sm:$0xff] }
 0x484   :  { %v804_v48 = vrot.slane %v803_v46, 1  ;;  %v811_v49 = vadd.f32 %v810_v47, %v809_v45  ;;  %v2248_v45 = vpack.c.bf16 %v1058_v41, %v1057_v40  ;;  %v1059_v47 = vld [vmem:[#allocation29 + $0x70] sm:$0xff] }
 0x486   :  { %v805_v51 = vadd.f32 %v804_v48, %v803_v46  ;;  %v812_v52 = vrot.slane %v811_v49, 1  ;;  %v2272_v46 = vpack.c.bf16 %v1042_v44, %v1041_v43  ;;  %v1060_v48 = vld [vmem:[#allocation29 + $0x78] sm:$0xff] }
 0x488   :  { %v806_v53 = vmul.f32 0.125, %v805_v51  ;;  %v813_v54 = vadd.f32 %v812_v52, %v811_v49  ;;  %v1043_v49 = vld [vmem:[#allocation28 + $0x70] sm:$0xff]  ;;  %v1044_v51 = vld [vmem:[#allocation28 + $0x78] sm:$0xff]  ;;  %v2251_v52 = vpack.c.bf16 %v1060_v48, %v1059_v47 }
 0x48a   :  { %v814_v55 = vmul.f32 0.125, %v813_v54  ;;  %v815_v56 = vmul.f32 %v806_v53, %v806_v53  ;;  %v819_v60 = vsub.f32 %v799_v39, %v806_v53  ;;  %v1040_v39 = vld [vmem:[#allocation28 + $0x58] sm:$0xff]  ;;  %v2275_v53 = vpack.c.bf16 %v1044_v51, %v1043_v49 }
 0x48b   :  { %v2269_v42 = vpack.c.bf16 %v1040_v39, %v1039_v37  ;;  %v1630_v54 = vld [vmem:[#allocation23] ss:$0 sm:$0xff] }
 0x48c   :  { %v816_v57 = vsub.f32 %v814_v55, %v815_v56  ;;  %v826_v63 = vmul.f32 %v1628_v61, %v819_v60  ;;  %v1631_v55 = vld [vmem:[#allocation26] ss:$0 sm:$0xff] }
 0x48e   :  { %v817_v58 = vmax.f32 %v816_v57, 0.0 }
 0x490   :  { %v827_v59 = vadd.f32 1e-05, %v817_v58 }
 0x492   :  { %2397 = vrsqrt.f32 %v827_v59 }
 0x49c   :  { %v2398_v5 = vpop.eup %2397 }
 0x49d   :  { %v829_v7 = vmul.f32 %v2398_v5, %v826_v63 }
 0x49f   :  { %v837_v11 = vadd.f32 %v1629_v6, %v829_v7  ;;  %v1248_v7 = vld [vmem:[#allocation35] sm:$0xff] }
 0x4a1   :  { %1932 = vmatmul.mubr.f32.vlgmr.msra.gmra.mrb[2].mxu1 %v837_v11  ;;  %1967 = vmatmul.mubr.f32.vlgmr.msra.gmra.mrb[4].mxu0 %v837_v11  ;;  %v1251_v11 = vld [vmem:[#allocation35 + $0x18] sm:$0xff] }
 0x4a2   :  { %2231 = vmatpush3.bf16.msra.mxu1 %v2230_v8  ;;  %2255 = vmatpush3.bf16.msra.mxu0 %v2254_v9  ;;  %v1249_v8 = vld [vmem:[#allocation35 + $0x8] sm:$0xff]  ;;  %v2281_v12 = vpack.c.bf16 %v1251_v11, %v1250_v10  ;;  %v1387_v10 = vld [vmem:[#allocation41 + $0x38] sm:$0xff] }
 0x4a3   :  { %2232 = vmatprep.subr.bf16.mxu1 %v3236_v0  ;;  %2256 = vmatprep.subr.bf16.mxu0 %v3236_v0  ;;  %v2278_v9 = vpack.c.bf16 %v1249_v8, %v1248_v7  ;;  %v1385_v7 = vld [vmem:[#allocation41 + $0x28] sm:$0xff] }
 0x4a4   :  { %2001 = vmatprep.mubr.msk.f32.mxu1 %vm3237_vm0, %v3238_v1  ;;  %2036 = vmatprep.mubr.msk.f32.mxu0 %vm3237_vm0, %v3238_v1 }
 0x4a6   :  { %2234 = vmatpush3.bf16.msra.mxu1 %v2233_v15  ;;  %2258 = vmatpush3.bf16.msra.mxu0 %v2257_v16  ;;  %v2284_v15 = vpack.c.bf16 %v1253_v14, %v1252_v13  ;;  %v1255_v16 = vld [vmem:[#allocation35 + $0x38] sm:$0xff]  ;;  %v1389_v13 = vld [vmem:[#allocation41 + $0x48] sm:$0xff] }
 0x4a7   :  { %2235 = vmatprep.subr.bf16.mxu1 %v3236_v0  ;;  %2259 = vmatprep.subr.bf16.mxu0 %v3236_v0 }
 0x4aa   :  { %2237 = vmatpush3.bf16.msra.mxu1 %v2236_v21  ;;  %2261 = vmatpush3.bf16.msra.mxu0 %v2260_v22  ;;  %v1258_v21 = vld [vmem:[#allocation35 + $0x50] sm:$0xff]  ;;  %v1259_v22 = vld [vmem:[#allocation35 + $0x58] sm:$0xff] }
 0x4ab   :  { %2238 = vmatprep.subr.bf16.mxu1 %v3236_v0  ;;  %2262 = vmatprep.subr.bf16.mxu0 %v3236_v0  ;;  %v2293_v23 = vpack.c.bf16 %v1259_v22, %v1258_v21  ;;  %v1395_v21 = vld [vmem:[#allocation41 + $0x78] sm:$0xff] }
 0x4ae   :  { %2240 = vmatpush3.bf16.msra.mxu1 %v2239_v25  ;;  %2264 = vmatpush3.bf16.msra.mxu0 %v2263_v28  ;;  %v1261_v25 = vld [vmem:[#allocation35 + $0x68] sm:$0xff]  ;;  %v1263_v28 = vld [vmem:[#allocation35 + $0x78] sm:$0xff] }
 0x4af   :  { %2241 = vmatprep.subr.bf16.mxu1 %v3236_v0  ;;  %2265 = vmatprep.subr.bf16.mxu0 %v3236_v0  ;;  %v2296_v26 = vpack.c.bf16 %v1261_v25, %v1260_v24  ;;  %v2299_v29 = vpack.c.bf16 %v1263_v28, %v1262_v27 }
 0x4b2   :  { %2243 = vmatpush3.bf16.msra.mxu1 %v2242_v31  ;;  %2267 = vmatpush3.bf16.msra.mxu0 %v2266_v34  ;;  %v1632_v31 = vld [vmem:[#allocation31] ss:$0 sm:$0xff] }
 0x4b3   :  { %2244 = vmatprep.subr.bf16.mxu1 %v3236_v0  ;;  %2268 = vmatprep.subr.bf16.mxu0 %v3236_v0 }
 0x4b6   :  { %2246 = vmatpush3.bf16.msra.mxu1 %v2245_v38  ;;  %2270 = vmatpush3.bf16.msra.mxu0 %v2269_v42 }
 0x4b7   :  { %2247 = vmatprep.subr.bf16.mxu1 %v3236_v0  ;;  %2271 = vmatprep.subr.bf16.mxu0 %v3236_v0 }
 0x4ba   :  { %2249 = vmatpush3.bf16.msra.mxu1 %v2248_v45  ;;  %2273 = vmatpush3.bf16.msra.mxu0 %v2272_v46 }
 0x4bb   :  { %2250 = vmatprep.subr.bf16.mxu1 %v3236_v0  ;;  %2274 = vmatprep.subr.bf16.mxu0 %v3236_v0 }
 0x4be   :  { %2252 = vmatpush3.bf16.msra.mxu1 %v2251_v52  ;;  %2276 = vmatpush3.bf16.msra.mxu0 %v2275_v53 }
 0x4bf   :  { %2277 = vmatprep.subr.bf16.mxu1 %v3236_v0  ;;  %2301 = vmatprep.subr.bf16.mxu0 %v3236_v0 }
 0x4c1   :  { %2002 = vmatmul.mubr.f32.vlgmr.msra.gmra.mrb[4].mxu1 %v3590_v50 }
 0x4c2   :  { %2071 = vmatprep.mubr.msk.f32.mxu1 %vm3237_vm0, %v3238_v1  ;;  %2279 = vmatpush3.bf16.msra.mxu1 %v2278_v9  ;;  %v1386_v9 = vld [vmem:[#allocation41 + $0x30] sm:$0xff] }
 0x4c3   :  { %2280 = vmatprep.subr.bf16.mxu1 %v3236_v0  ;;  %v2311_v11 = vpack.c.bf16 %v1387_v10, %v1386_v9 }
 0x4c6   :  { %2282 = vmatpush3.bf16.msra.mxu1 %v2281_v12  ;;  %v1388_v12 = vld [vmem:[#allocation41 + $0x40] sm:$0xff] }
 0x4c7   :  { %2283 = vmatprep.subr.bf16.mxu1 %v3236_v0  ;;  %v2314_v14 = vpack.c.bf16 %v1389_v13, %v1388_v12 }
 0x4ca   :  { %2285 = vmatpush3.bf16.msra.mxu1 %v2284_v15  ;;  %v1390_v15 = vld [vmem:[#allocation41 + $0x50] sm:$0xff] }
 0x4cb   :  { %2286 = vmatprep.subr.bf16.mxu1 %v3236_v0 }
 0x574   :  { %v927_v56 = vpop.f32.mrb[2].mxu1  ;;  %v1020_v57 = vpop.f32.mrb[4].mxu0 }
 0x575   :  { %v928_v58 = vadd.f32 %v1630_v54, %v927_v56  ;;  %v1021_v59 = vadd.f32 %v1631_v55, %v1020_v57  ;;  %v1933_v60 = vpop.f32.mrb[3].mxu1  ;;  %v1968_v61 = vpop.f32.mrb[5].mxu0  ;;  %v1633_v57 = vld [vmem:[#allocation32] ss:$0 sm:$0xff] }
 0x576   :  { %v1634_v60 = vld [vmem:[#allocation34] ss:$0 sm:$0xff] }
 0x577   :  { %1520 = vst [vmem:[#allocation50] sm:$0xff] %v928_v58  ;;  %v1024_v62 = vmul.f32 0.5, %v1021_v59  ;;  %1521 = vst [vmem:[#allocation51] sm:$0xff] %v1021_v59 }
 0x579   :  { %v1025_v63 = vmul.f32 1.442695, %v1024_v62 }
 0x57b   :  { %2399 = vpow2.f32 %v1025_v63  ;;  %v1380_v63 = vld [vmem:[#allocation41] sm:$0xff] }
 0x585   :  { %v2400_v3 = vpop.eup %2399 }
 0x586   :  { %v1027_v4 = vmul.f32 %v2400_v3, %v486_v2  ;;  %v1381_v2 = vld [vmem:[#allocation41 + $0x8] sm:$0xff] }
 0x587   :  { %v2302_v3 = vpack.c.bf16 %v1381_v2, %v1380_v63 }
 0x588   :  { %v1028_v50 = vadd.f32 %v1027_v4, %v928_v58  ;;  %v1382_v4 = vld [vmem:[#allocation41 + $0x10] sm:$0xff] }
 0x58a   :  { %2037 = vmatmul.mubr.f32.vlgmr.msra.gmra.mrb[6].mxu0 %v1028_v50  ;;  %1519 = vst [vmem:[#allocation48] sm:$0xff] %v1028_v50  ;;  %v1383_v50 = vld [vmem:[#allocation41 + $0x18] sm:$0xff] }
 0x58b   :  { %2106 = vmatprep.mubr.msk.f32.mxu0 %vm3237_vm0, %v3238_v1  ;;  %v1254_v1 = vld [vmem:[#allocation35 + $0x30] sm:$0xff]  ;;  %2303 = vmatpush3.bf16.msra.mxu0 %v2302_v3 }
 0x58c   :  { %v2287_v17 = vpack.c.bf16 %v1255_v16, %v1254_v1  ;;  %2304 = vmatprep.subr.bf16.mxu0 %v3236_v0  ;;  %v1391_v1 = vld [vmem:[#allocation41 + $0x58] sm:$0xff] }
 0x58d   :  { %v2317_v16 = vpack.c.bf16 %v1391_v1, %v1390_v15 }
 0x58e   :  { %2288 = vmatpush3.bf16.msra.mxu1 %v2287_v17  ;;  %v1392_v17 = vld [vmem:[#allocation41 + $0x60] sm:$0xff] }
 0x58f   :  { %2289 = vmatprep.subr.bf16.mxu1 %v3236_v0  ;;  %v2320_v19 = vpack.c.bf16 %v1393_v18, %v1392_v17 }
 0x592   :  { %2291 = vmatpush3.bf16.msra.mxu1 %v2290_v20  ;;  %v1394_v20 = vld [vmem:[#allocation41 + $0x70] sm:$0xff] }
 0x593   :  { %2292 = vmatprep.subr.bf16.mxu1 %v3236_v0  ;;  %v2323_v22 = vpack.c.bf16 %v1395_v21, %v1394_v20 }
 0x594   :  { %v1127_v5 = vpop.f32.mrb[4].mxu1 }
 0x595   :  { %v2003_v6 = vpop.f32.mrb[5].mxu1 }
 0x596   :  { %2294 = vmatpush3.bf16.msra.mxu1 %v2293_v23  ;;  %v1384_v6 = vld [vmem:[#allocation41 + $0x20] sm:$0xff]  ;;  %v1635_v23 = vld [vmem:[#allocation37] ss:$0 sm:$0xff] }
 0x597   :  { %2295 = vmatprep.subr.bf16.mxu1 %v3236_v0  ;;  %v2308_v8 = vpack.c.bf16 %v1385_v7, %v1384_v6 }
 0x59a   :  { %2297 = vmatpush3.bf16.msra.mxu1 %v2296_v26 }
 0x59b   :  { %2298 = vmatprep.subr.bf16.mxu1 %v3236_v0 }
 0x59e   :  { %2300 = vmatpush3.bf16.msra.mxu1 %v2299_v29 }
 0x65d   :  { %v1197_v30 = vpop.f32.mrb[6].mxu0 }
 0x65e   :  { %v1198_v32 = vadd.f32 %v1197_v30, %v1127_v5  ;;  %v2038_v33 = vpop.f32.mrb[7].mxu0  ;;  %v2305_v5 = vpack.c.bf16 %v1383_v50, %v1382_v4 }
 0x660   :  { %v1208_v34 = vadd.f32 %v1632_v31, %v1198_v32  ;;  %2306 = vmatpush3.bf16.msra.mxu0 %v2305_v5 }
 0x661   :  { %2307 = vmatprep.subr.bf16.mxu0 %v3236_v0 }
 0x662   :  { %v1209_v35 = vmax.f32 %v1208_v34, 0.0 }
 0x664   :  { %v1210_v36 = vrot.slane %v1209_v35, 4  ;;  %v1217_v37 = vmul.f32 %v1209_v35, %v1209_v35  ;;  %2309 = vmatpush3.bf16.msra.mxu0 %v2308_v8 }
 0x665   :  { %2310 = vmatprep.subr.bf16.mxu0 %v3236_v0 }
 0x666   :  { %v1211_v38 = vadd.f32 %v1210_v36, %v1209_v35  ;;  %v1218_v39 = vrot.slane %v1217_v37, 4 }
 0x668   :  { %v1212_v40 = vrot.slane %v1211_v38, 2  ;;  %v1219_v41 = vadd.f32 %v1218_v39, %v1217_v37  ;;  %2312 = vmatpush3.bf16.msra.mxu0 %v2311_v11 }
 0x669   :  { %2313 = vmatprep.subr.bf16.mxu0 %v3236_v0 }
 0x66a   :  { %v1213_v42 = vadd.f32 %v1212_v40, %v1211_v38  ;;  %v1220_v43 = vrot.slane %v1219_v41, 2 }
 0x66c   :  { %v1214_v44 = vrot.slane %v1213_v42, 1  ;;  %v1221_v45 = vadd.f32 %v1220_v43, %v1219_v41  ;;  %2315 = vmatpush3.bf16.msra.mxu0 %v2314_v14 }
 0x66d   :  { %2316 = vmatprep.subr.bf16.mxu0 %v3236_v0 }
 0x66e   :  { %v1215_v46 = vadd.f32 %v1214_v44, %v1213_v42  ;;  %v1222_v47 = vrot.slane %v1221_v45, 1 }
 0x670   :  { %v1216_v48 = vmul.f32 0.125, %v1215_v46  ;;  %v1223_v49 = vadd.f32 %v1222_v47, %v1221_v45  ;;  %2318 = vmatpush3.bf16.msra.mxu0 %v2317_v16  ;;  %v1636_v47 = vld [vmem:[#allocation38] ss:$0 sm:$0xff] }
 0x671   :  { %2319 = vmatprep.subr.bf16.mxu0 %v3236_v0 }
 0x672   :  { %v1224_v51 = vmul.f32 0.125, %v1223_v49  ;;  %v1225_v52 = vmul.f32 %v1216_v48, %v1216_v48  ;;  %v1229_v56 = vsub.f32 %v1209_v35, %v1216_v48 }
 0x674   :  { %v1226_v53 = vsub.f32 %v1224_v51, %v1225_v52  ;;  %v1236_v58 = vmul.f32 %v1633_v57, %v1229_v56  ;;  %2321 = vmatpush3.bf16.msra.mxu0 %v2320_v19  ;;  %v1637_v51 = vld [vmem:[#allocation40] ss:$0 sm:$0xff] }
 0x675   :  { %2322 = vmatprep.subr.bf16.mxu0 %v3236_v0 }
 0x676   :  { %v1227_v54 = vmax.f32 %v1226_v53, 0.0 }
 0x678   :  { %v1237_v55 = vadd.f32 1e-05, %v1227_v54  ;;  %2324 = vmatpush3.bf16.msra.mxu0 %v2323_v22 }
 0x67a   :  { %2401 = vrsqrt.f32 %v1237_v55 }
 0x684   :  { %v2402_v59 = vpop.eup %2401 }
 0x685   :  { %v1239_v61 = vmul.f32 %v2402_v59, %v1236_v58 }
 0x687   :  { %v1247_v62 = vadd.f32 %v1634_v60, %v1239_v61 }
 0x689   :  { %2072 = vmatmul.mubr.f32.vlgmr.msra.gmra.mrb[6].mxu1 %v1247_v62 }
 0x75c   :  { %v1337_v24 = vpop.f32.mrb[6].mxu1 }
 0x75d   :  { %v1338_v25 = vadd.f32 %v1635_v23, %v1337_v24  ;;  %v2073_v26 = vpop.f32.mrb[7].mxu1 }
 0x75f   :  { %v1341_v27 = vmax.f32 %v1338_v25, 0.0 }
 0x761   :  { %v1342_v28 = vrot.slane %v1341_v27, 4  ;;  %v1349_v29 = vmul.f32 %v1341_v27, %v1341_v27 }
 0x763   :  { %v1343_v30 = vadd.f32 %v1342_v28, %v1341_v27  ;;  %v1350_v31 = vrot.slane %v1349_v29, 4 }
 0x765   :  { %v1344_v32 = vrot.slane %v1343_v30, 2  ;;  %v1351_v33 = vadd.f32 %v1350_v31, %v1349_v29 }
 0x767   :  { %v1345_v34 = vadd.f32 %v1344_v32, %v1343_v30  ;;  %v1352_v35 = vrot.slane %v1351_v33, 2 }
 0x769   :  { %v1346_v36 = vrot.slane %v1345_v34, 1  ;;  %v1353_v37 = vadd.f32 %v1352_v35, %v1351_v33 }
 0x76b   :  { %v1347_v38 = vadd.f32 %v1346_v36, %v1345_v34  ;;  %v1354_v39 = vrot.slane %v1353_v37, 1 }
 0x76d   :  { %v1348_v40 = vmul.f32 0.125, %v1347_v38  ;;  %v1355_v0 = vadd.f32 %v1354_v39, %v1353_v37 }
 0x76f   :  { %v1356_v41 = vmul.f32 0.125, %v1355_v0  ;;  %v1357_v42 = vmul.f32 %v1348_v40, %v1348_v40  ;;  %v1361_v46 = vsub.f32 %v1341_v27, %v1348_v40 }
 0x771   :  { %v1358_v43 = vsub.f32 %v1356_v41, %v1357_v42  ;;  %v1368_v48 = vmul.f32 %v1636_v47, %v1361_v46 }
 0x773   :  { %v1359_v44 = vmax.f32 %v1358_v43, 0.0 }
 0x775   :  { %v1369_v45 = vadd.f32 1e-05, %v1359_v44 }
 0x777   :  { %2403 = vrsqrt.f32 %v1369_v45 }
 0x781   :  { %v2404_v49 = vpop.eup %2403 }
 0x782   :  { %v1371_v52 = vmul.f32 %v2404_v49, %v1368_v48 }
 0x784   :  { %v1379_v53 = vadd.f32 %v1637_v51, %v1371_v52 }
 0x786   :  { %2107 = vmatmul.mubr.f32.vlgmr.msra.gmra.mrb[8].mxu0 %v1379_v53 }
 0x787   :  { %3060 = shalt.err (!%p3057_p12)
}
 0x788   :  { %s3061_s21 = scalar_lea.hbm %s3401_s12, 128 }
 0x789   :  { %p3062_p13 = scmp.ne.s32.totalorder %s3401_s12, %s3061_s21  ;;  %p3065_p0 = scmp.lt.u32.totalorder %s3061_s21, %s3401_s12 }
 0x78b   :  { %p3067_p1 = pnand %p3065_p0, %p3062_p13 }
 0x78d   :  { %3070 = shalt.err (!%p3067_p1)
}
 0x78e   :  { %1541 = dma.vmem_to_hbm [thread:$0]  %s1539_s0, 128, %s3401_s12, [#allocation49]  }
 0x78f   :  { %s3240_s4 = smov [#allocation50]  }
 0x790   :  { %s1548_s14 = sshll.u32 %s3240_s4, 4  ;;  %s1549_s14 = int_to_ptr.vmem [resolvable:$true] %s1548_s14 }
 0x791   :  { %s3071_s1 = scalar_lea.vmem %s1549_s14, 128  ;;  %p3076_p3 = scmp.lt.s32.totalorder %s1549_s14, %s1549_s14 }
 0x792   :  { %p3072_p2 = scmp.ne.s32.totalorder %s1549_s14, %s3071_s1  ;;  %p3077_p4 = scmp.lt.s32.totalorder %s3071_s1, %s3071_s1 }
 0x794   :  { %p3078_p5 = por %p3077_p4, %p3076_p3 }
 0x796   :  { %p3079_p6 = pnand %p3078_p5, %p3072_p2 }
 0x798   :  { %3082 = shalt.err (!%p3079_p6)
}
 0x799   :  { %s3083_s17 = scalar_lea.hbm %s3406_s5, 128 }
 0x79a   :  { %p3084_p7 = scmp.ne.s32.totalorder %s3406_s5, %s3083_s17  ;;  %p3087_p8 = scmp.lt.u32.totalorder %s3083_s17, %s3406_s5 }
 0x79c   :  { %p3089_p9 = pnand %p3087_p8, %p3084_p7 }
 0x79e   :  { %3092 = shalt.err (!%p3089_p9)
}
 0x79f   :  { %1551 = dma.vmem_to_hbm [thread:$0]  %s1549_s14, 128, %s3406_s5, [#allocation49]  }
 0x7a0   :  { %s3241_s12 = smov [#allocation51]  }
 0x7a1   :  { %s1558_s2 = sshll.u32 %s3241_s12, 4  ;;  %s1559_s2 = int_to_ptr.vmem [resolvable:$true] %s1558_s2 }
 0x7a2   :  { %s3093_s30 = scalar_lea.vmem %s1559_s2, 128  ;;  %p3098_p11 = scmp.lt.s32.totalorder %s1559_s2, %s1559_s2 }
 0x7a3   :  { %p3094_p10 = scmp.ne.s32.totalorder %s1559_s2, %s3093_s30  ;;  %p3099_p12 = scmp.lt.s32.totalorder %s3093_s30, %s3093_s30 }
 0x7a5   :  { %p3100_p13 = por %p3099_p12, %p3098_p11 }
 0x7a7   :  { %p3101_p0 = pnand %p3100_p13, %p3094_p10 }
 0x7a9   :  { %3104 = shalt.err (!%p3101_p0)
}
 0x7aa   :  { %s3105_s7 = scalar_lea.hbm %s3411_s27, 128 }
 0x7ab   :  { %p3106_p1 = scmp.ne.s32.totalorder %s3411_s27, %s3105_s7  ;;  %p3109_p2 = scmp.lt.u32.totalorder %s3105_s7, %s3411_s27 }
 0x7ad   :  { %p3111_p3 = pnand %p3109_p2, %p3106_p1 }
 0x7af   :  { %3114 = shalt.err (!%p3111_p3)
}
 0x7b0   :  { %1561 = dma.vmem_to_hbm [thread:$0]  %s1559_s2, 128, %s3411_s27, [#allocation52]   ;;  %v1638_v54 = vld [vmem:[#allocation43] ss:$0 sm:$0xff]  ;;  %v1639_v1 = vld [vmem:[#allocation44] ss:$0 sm:$0xff] }
 0x7b1   :  { %v1640_v18 = vld [vmem:[#allocation46] ss:$0 sm:$0xff]  ;;  %s3242_s5 = smov [#allocation47]  }
 0x7b2   :  { %s1528_s27 = sshll.u32 %s3242_s5, 4  ;;  %s1529_s27 = int_to_ptr.vmem [resolvable:$true] %s1528_s27 }
 0x7b3   :  { %s3115_s10 = scalar_lea.vmem %s1529_s27, 128  ;;  %p3120_p5 = scmp.lt.s32.totalorder %s1529_s27, %s1529_s27 }
 0x7b4   :  { %p3116_p4 = scmp.ne.s32.totalorder %s1529_s27, %s3115_s10  ;;  %p3121_p6 = scmp.lt.s32.totalorder %s3115_s10, %s3115_s10 }
 0x7b6   :  { %p3122_p7 = por %p3121_p6, %p3120_p5 }
 0x7b8   :  { %p3123_p8 = pnand %p3122_p7, %p3116_p4 }
 0x859   :  { %v1469_v55 = vpop.f32.mrb[8].mxu0 }
 0x85a   :  { %v1470_v56 = vadd.f32 %v1638_v54, %v1469_v55  ;;  %v2108_v57 = vpop.f32.mrb[9].mxu0 }
 0x85c   :  { %v1473_v58 = vmax.f32 %v1470_v56, 0.0 }
 0x85e   :  { %v1474_v59 = vrot.slane %v1473_v58, 4  ;;  %v1481_v60 = vmul.f32 %v1473_v58, %v1473_v58 }
 0x860   :  { %v1475_v61 = vadd.f32 %v1474_v59, %v1473_v58  ;;  %v1482_v62 = vrot.slane %v1481_v60, 4 }
 0x862   :  { %v1476_v63 = vrot.slane %v1475_v61, 2  ;;  %v1483_v2 = vadd.f32 %v1482_v62, %v1481_v60 }
 0x864   :  { %v1477_v3 = vadd.f32 %v1476_v63, %v1475_v61  ;;  %v1484_v4 = vrot.slane %v1483_v2, 2 }
 0x866   :  { %v1478_v50 = vrot.slane %v1477_v3, 1  ;;  %v1485_v5 = vadd.f32 %v1484_v4, %v1483_v2 }
 0x868   :  { %v1479_v6 = vadd.f32 %v1478_v50, %v1477_v3  ;;  %v1486_v7 = vrot.slane %v1485_v5, 1 }
 0x86a   :  { %v1480_v8 = vmul.f32 0.125, %v1479_v6  ;;  %v1487_v9 = vadd.f32 %v1486_v7, %v1485_v5 }
 0x86c   :  { %v1488_v10 = vmul.f32 0.125, %v1487_v9  ;;  %v1489_v11 = vmul.f32 %v1480_v8, %v1480_v8  ;;  %v1493_v15 = vsub.f32 %v1473_v58, %v1480_v8 }
 0x86e   :  { %v1490_v12 = vsub.f32 %v1488_v10, %v1489_v11  ;;  %v1500_v16 = vmul.f32 %v1639_v1, %v1493_v15 }
 0x870   :  { %v1491_v13 = vmax.f32 %v1490_v12, 0.0 }
 0x872   :  { %v1501_v14 = vadd.f32 1e-05, %v1491_v13 }
 0x874   :  { %2405 = vrsqrt.f32 %v1501_v14 }
 0x87e   :  { %v2406_v17 = vpop.eup %2405 }
 0x87f   :  { %v1503_v19 = vmul.f32 %v2406_v17, %v1500_v16 }
 0x881   :  { %v1511_v20 = vadd.f32 %v1640_v18, %v1503_v19 }
 0x883   :  { %v1512_v21 = vsub.f32 0.0, %v1511_v20 }
 0x885   :  { %v1513_v22 = vmul.f32 1.442695, %v1512_v21 }
 0x887   :  { %2407 = vpow2.f32 %v1513_v22 }
 0x891   :  { %v2408_v23 = vpop.eup %2407 }
 0x892   :  { %v1515_v24 = vadd.f32 1.0, %v2408_v23 }
 0x894   :  { %2409 = vrcp.f32 %v1515_v24 }
 0x89e   :  { %v2410_v25 = vpop.eup %2409 }
 0x89f   :  { %1518 = vst [vmem:[#allocation47] sm:$0xff] %v2410_v25 }
 0x8a0   :  { %3126 = shalt.err (!%p3123_p8)
}
 0x8a1   :  { %s3127_s24 = scalar_lea.hbm %s3396_s13, 128 }
 0x8a2   :  { %p3128_p9 = scmp.ne.s32.totalorder %s3396_s13, %s3127_s24  ;;  %p3131_p10 = scmp.lt.u32.totalorder %s3127_s24, %s3396_s13 }
 0x8a4   :  { %p3133_p11 = pnand %p3131_p10, %p3128_p9 }
 0x8a6   :  { %3136 = shalt.err (!%p3133_p11)
}
 0x8a7   :  { %1531 = dma.vmem_to_hbm [thread:$0]  %s1529_s27, 128, %s3396_s13, [#allocation4]  }
 0x8a8   :  { %3167 = dma.done.wait [#allocation4], 128  }
 0x8a9   :  { %3168 = vsyncadd [#allocation4], 4294967168 }
 0x8aa   :  { %3169 = dma.done.wait [#allocation49], 256  }
 0x8ab   :  { %3170 = vsyncadd [#allocation49], 4294967040 }
 0x8ac   :  { %3171 = dma.done.wait [#allocation52], 128  }
 0x8ad   :  { %3172 = vsyncadd [#allocation52], 4294967168 }
 0x8ae   :  { %1574 = vsyncpa [#allocation3], 1 }
 0x8af   :  { %1575 = vsyncpa [#allocation6], 1 }
 0x8b0   :  { %1576 = vsyncpa [#allocation9], 1 }
 0x8b1   :  { %1577 = vsyncpa [#allocation12], 1 }
 0x8b2   :  { %1578 = vsyncpa [#allocation15], 1 }
 0x8b3   :  { %1579 = vsyncpa [#allocation18], 1 }
 0x8b4   :  { %1580 = vsyncpa [#allocation21], 1 }
 0x8b5   :  { %1581 = vsyncpa [#allocation24], 1 }
 0x8b6   :  { %1582 = vsyncpa [#allocation27], 1 }
 0x8b7   :  { %1583 = vsyncpa [#allocation30], 1 }
 0x8b8   :  { %1584 = vsyncpa [#allocation33], 1 }
 0x8b9   :  { %1585 = vsyncpa [#allocation36], 1 }
 0x8ba   :  { %1586 = vsyncpa [#allocation39], 1 }
 0x8bb   :  { %1587 = vsyncpa [#allocation42], 1 }
 0x8bc   :  { %1588 = vsyncpa [#allocation45], 1 }
 0x8bd   :  { %1589 = vsyncpa [#allocation4], 1 }
 0x8be   :  { %1590 = vsyncpa [#allocation49], 1 }
 0x8bf   :  { %1591 = vsyncpa [#allocation52], 1 }

</bundles_post_ra>
